<compile_context>
chip_gen: v6e
topology: v6e:2x2x1
jax: 0.10.0
libtpu: 0.0.40
codegen_flags: <defaults>
</compile_context>

<pallas_src>
import functools
import math

import jax
import jax.numpy as jnp
from jax import lax
from jax.experimental import pallas as pl
from jax.experimental.pallas import tpu as pltpu


_VMEM_SPEC = pl.BlockSpec(memory_space=pltpu.MemorySpace.VMEM)


# ----------------------------------------------------------------------------
# Fully fused ANP kernel
# ----------------------------------------------------------------------------
def _anp_fused_kernel(xy_ref, x_ref, eps_ref,
                      lw0_ref, lwm_ref, lwp_ref, lwo_ref, lb_ref, lob_ref,
                      dw0_ref, dwm_ref, db_ref, qkw_ref, qkb_ref,
                      wr_ref, wz_ref, dmw_ref, dlw_ref, dcb_ref,
                      stats_ref, out_ref,
                      *, B, Nc, Nt, latent_dim, hidden_dim,
                      n_lat_mid, n_det_mid, n_dec_mid, has_target):
    f32 = jnp.float32
    bf16 = jnp.bfloat16
    H = hidden_dim
    Mc = B * Nc
    Mt = B * Nt
    M = Mc + (Mt if has_target else 0)
    P = 2 * B if has_target else B

    def mm(a, w):
        # MXU matmul: bf16 x bf16 -> f32 accumulation.
        return jnp.dot(a.astype(bf16), w, preferred_element_type=f32)

    # -------------- latent encoder (prior & posterior rows share the MLP) ------
    xy = xy_ref[...]                                   # (M, x+y) f32, ctx rows first
    lbias = lb_ref[...]                                # (n_lat_mid + 2, H) f32
    h = jnp.maximum(mm(xy, lw0_ref[...]) + lbias[0], 0.0)
    for l in range(n_lat_mid):
        h = jnp.maximum(mm(h, lwm_ref[l]) + lbias[l + 1], 0.0)

    # block-diagonal mean-pool matrix, generated in-kernel (no HBM input, no
    # integer division: static unrolled per-batch compares on iota values).
    prow = lax.broadcasted_iota(jnp.int32, (P, M), 0)
    pcol = lax.broadcasted_iota(jnp.int32, (P, M), 1)
    pool = jnp.zeros((P, M), f32)
    for b in range(B):
        if has_target:
            in_tgt = ((prow == b) & (pcol >= Mc + b * Nt)
                      & (pcol < Mc + (b + 1) * Nt))
            pool = jnp.where(in_tgt, 1.0 / Nt, pool)           # rows [0,B): posterior
            in_ctx = (prow == B + b) & (pcol >= b * Nc) & (pcol < (b + 1) * Nc)
            pool = jnp.where(in_ctx, 1.0 / Nc, pool)           # rows [B,2B): prior
        else:
            in_ctx = (prow == b) & (pcol >= b * Nc) & (pcol < (b + 1) * Nc)
            pool = jnp.where(in_ctx, 1.0 / Nc, pool)           # rows [0,B): prior
    pooled = jnp.dot(pool, h, preferred_element_type=f32)      # (P, H)

    hp = jnp.maximum(mm(pooled, lwp_ref[...]) + lbias[n_lat_mid + 1], 0.0)
    stats = mm(hp, lwo_ref[...]) + lob_ref[...]                # (P, 2*latent)
    stats_ref[...] = stats

    # reparameterization: rows [0,B) are the z-source (posterior if target_y is
    # given, else prior) so this slice stays sublane-aligned at row 0.
    zsrc = stats[:B, :]
    z = zsrc[:, :latent_dim] + jnp.exp(0.5 * zsrc[:, latent_dim:]) * eps_ref[...]

    # -------------- deterministic encoder over context rows --------------------
    dbias = db_ref[...]                                 # (n_det_mid + 1, H) f32
    v = jnp.maximum(mm(xy[:Mc, :], dw0_ref[...]) + dbias[0], 0.0)
    for l in range(n_det_mid):
        v = jnp.maximum(mm(v, dwm_ref[l]) + dbias[l + 1], 0.0)

    # -------------- cross attention --------------------------------------------
    # merged projection: qkw = [wq/sqrt(H) | wk | dec_wx] -> one wide-N MXU push
    xall = x_ref[...]                                   # (Mt + Mc, x_dim), tgt rows first
    qkx = mm(xall, qkw_ref[...]) + qkb_ref[...]         # (Mt + Mc, 3H)
    q = qkx[:Mt, :H]
    k = qkx[Mt:, H:2 * H]
    hx = qkx[:Mt, 2 * H:]                               # decoder layer-0 x-contribution

    s = lax.dot_general(q.astype(bf16), k.astype(bf16),
                        (((1,), (1,)), ((), ())),
                        preferred_element_type=f32)     # (Mt, Mc)
    srow = lax.broadcasted_iota(jnp.int32, (Mt, Mc), 0)
    scol = lax.broadcasted_iota(jnp.int32, (Mt, Mc), 1)
    same = None
    for b in range(B):
        blk = ((srow >= b * Nt) & (srow < (b + 1) * Nt)
               & (scol >= b * Nc) & (scol < (b + 1) * Nc))
        same = blk if same is None else (same | blk)
    s = jnp.where(same, s, -1e30)
    s = s - jnp.max(s, axis=-1, keepdims=True)
    p = jnp.exp(s)
    p = p * pl.reciprocal(jnp.sum(p, axis=-1, keepdims=True), approx=True)
    r = jnp.dot(p.astype(bf16), v.astype(bf16), preferred_element_type=f32)   # (Mt, H)

    # -------------- decoder -----------------------------------------------------
    dcbias = dcb_ref[...]                               # (n_dec_mid + 2, H) f32
    zc = mm(z, wz_ref[...])                             # (B, H)
    # replicate z's contribution to every target row of its batch (pure VPU).
    ridx = lax.broadcasted_iota(jnp.int32, (Mt, H), 0)
    hz = jnp.zeros((Mt, H), f32)
    for b in range(B):
        hz = jnp.where((ridx >= b * Nt) & (ridx < (b + 1) * Nt),
                       zc[b:b + 1, :], hz)

    hd = jnp.maximum(mm(r, wr_ref[...]) + hz + hx + dcbias[0], 0.0)
    for l in range(n_dec_mid):
        hd = jnp.maximum(mm(hd, dmw_ref[l]) + dcbias[l + 1], 0.0)
    # last layer: weight/bias zero-padded to a lane-dense H-wide slab (no ReLU).
    out_ref[...] = mm(hd, dlw_ref[...]) + dcbias[n_dec_mid + 1]


def anp_fused_call(pk, xy_rows, x_rows, eps, *, B, Nc, Nt, latent_dim,
                   hidden_dim, has_target):
    H = hidden_dim
    Mc, Mt = B * Nc, B * Nt
    M = Mc + (Mt if has_target else 0)
    P = 2 * B if has_target else B
    n_lat_mid = pk["lwm"].shape[0]
    n_det_mid = pk["dwm"].shape[0]
    n_dec_mid = pk["dmw"].shape[0]
    x_dim = x_rows.shape[1]
    xy_dim = xy_rows.shape[1]

    args = [xy_rows, x_rows, eps,
            pk["lw0"], pk["lwm"], pk["lwp"], pk["lwo"], pk["lb"], pk["lob"],
            pk["dw0"], pk["dwm"], pk["db"], pk["qkw"], pk["qkb"],
            pk["wr"], pk["wz"], pk["dmw"], pk["dlw"], pk["dcb"]]

    out_shape = (jax.ShapeDtypeStruct((P, 2 * latent_dim), jnp.float32),
                 jax.ShapeDtypeStruct((Mt, H), jnp.float32))

    flops = 2 * (M * xy_dim * H + n_lat_mid * M * H * H            # latent MLP
                 + P * M * H + P * H * H + P * H * 2 * latent_dim  # pool/penult/proj
                 + Mc * xy_dim * H + n_det_mid * Mc * H * H        # det MLP
                 + (Mt + Mc) * x_dim * 3 * H                       # q|k|x projection
                 + 2 * Mt * Mc * H                                 # scores + p@v
                 + B * latent_dim * H                              # z @ wz
                 + (n_dec_mid + 2) * Mt * H * H)                   # decoder
    transcendentals = Mt * Mc + B * latent_dim + Mt
    bytes_accessed = sum(int(a.size) * a.dtype.itemsize for a in args)
    bytes_accessed += sum(int(math.prod(s.shape)) * 4 for s in out_shape)

    kernel = functools.partial(
        _anp_fused_kernel, B=B, Nc=Nc, Nt=Nt, latent_dim=latent_dim,
        hidden_dim=H, n_lat_mid=n_lat_mid, n_det_mid=n_det_mid,
        n_dec_mid=n_dec_mid, has_target=has_target)

    return pl.pallas_call(
        kernel,
        in_specs=[_VMEM_SPEC] * len(args),
        out_specs=(_VMEM_SPEC, _VMEM_SPEC),
        out_shape=out_shape,
        cost_estimate=pl.CostEstimate(flops=flops,
                                      transcendentals=transcendentals,
                                      bytes_accessed=bytes_accessed),
    )(*args)


# ----------------------------------------------------------------------------
# Parameter initialization (deterministic, synthetic) + one-time packing
# ----------------------------------------------------------------------------
def _init_linear(key, din, dout):
    w = jax.random.normal(key, (din, dout), jnp.float32) * (1.0 / math.sqrt(din))
    b = jnp.zeros((1, dout), jnp.float32)
    return w, b


def init_anp_params(key, x_dim, y_dim, latent_dim, hidden_dim,
                    latent_layers=6, det_layers=6, dec_layers=4):
    keys = iter(jax.random.split(key, 64))

    def mlp_params(din, dhid, dout, n_layers, last_is_out=False):
        dims = [din] + [dhid] * (n_layers - 1) + [dout if last_is_out else dhid]
        return [_init_linear(next(keys), dims[i], dims[i + 1]) for i in range(n_layers)]

    return {
        "latent": {
            "mlp": mlp_params(x_dim + y_dim, hidden_dim, hidden_dim, latent_layers),
            "penult": _init_linear(next(keys), hidden_dim, hidden_dim),
            # merged [mean | logvar] projection
            "proj": _init_linear(next(keys), hidden_dim, 2 * latent_dim),
        },
        "det": {
            "mlp": mlp_params(x_dim + y_dim, hidden_dim, hidden_dim, det_layers),
            "q": _init_linear(next(keys), x_dim, hidden_dim),
            "k": _init_linear(next(keys), x_dim, hidden_dim),
        },
        "dec": {
            "mlp": mlp_params(hidden_dim + latent_dim + x_dim, hidden_dim,
                              2 * y_dim, dec_layers, last_is_out=True),
        },
    }


def pack_anp_params(params, x_dim, y_dim, latent_dim, hidden_dim):
    """One-time packing: bf16 weight slabs + stacked f32 bias slabs."""
    bf = jnp.bfloat16
    lat, det, dec = params["latent"], params["det"], params["dec"]
    H = hidden_dim
    assert 2 * y_dim <= H, "decoder output is padded into an H-wide lane-dense slab"

    lw0 = lat["mlp"][0][0].astype(bf)                                     # (x+y, H)
    lwm = jnp.stack([w for w, _ in lat["mlp"][1:]]).astype(bf)            # (L-1, H, H)
    lwp = lat["penult"][0].astype(bf)                                     # (H, H)
    lwo = lat["proj"][0].astype(bf)                                       # (H, 2*latent)
    lb = jnp.concatenate([b for _, b in lat["mlp"]] + [lat["penult"][1]], axis=0)
    lob = lat["proj"][1]                                                  # (1, 2*latent)

    dw0 = det["mlp"][0][0].astype(bf)
    dwm = jnp.stack([w for w, _ in det["mlp"][1:]]).astype(bf)
    db = jnp.concatenate([b for _, b in det["mlp"]], axis=0)

    # decoder first-layer weight split over [r | z | x]
    w1, b1 = dec["mlp"][0]
    wr = w1[:H].astype(bf)
    wz = w1[H:H + latent_dim].astype(bf)
    wx = w1[H + latent_dim:]                                              # (x_dim, H)

    # merged [q/sqrt(H) | k | dec_x] projection of the raw x features
    scale = 1.0 / math.sqrt(H)
    (wq, bq), (wk, bk) = det["q"], det["k"]
    qkw = jnp.concatenate([wq * scale, wk, wx], axis=1).astype(bf)        # (x_dim, 3H)
    qkb = jnp.concatenate([bq * scale, bk, jnp.zeros((1, H), jnp.float32)], axis=1)

    dmw = jnp.stack([w for w, _ in dec["mlp"][1:-1]]).astype(bf)          # (L-2, H, H)
    wl, bl = dec["mlp"][-1]
    dlw = jnp.zeros((H, H), jnp.float32).at[:, :wl.shape[1]].set(wl).astype(bf)
    blp = jnp.zeros((1, H), jnp.float32).at[:, :bl.shape[1]].set(bl)
    dcb = jnp.concatenate([b1] + [b for _, b in dec["mlp"][1:-1]] + [blp], axis=0)

    return dict(lw0=lw0, lwm=lwm, lwp=lwp, lwo=lwo, lb=lb, lob=lob,
                dw0=dw0, dwm=dwm, db=db, qkw=qkw, qkb=qkb,
                wr=wr, wz=wz, dmw=dmw, dlw=dlw, dcb=dcb)


# ----------------------------------------------------------------------------
# Loss helpers
# ----------------------------------------------------------------------------
def gaussian_log_prob(mean, std, y):
    # TODO(synk): reduction (mean over batch/points/y_dim) may differ from the
    # reference PyTorch gaussian_log_prob; that helper is not part of the spec.
    lp = -0.5 * jnp.square((y - mean) / std) - jnp.log(std) - 0.5 * math.log(2.0 * math.pi)
    return jnp.mean(lp)


def kl_div(prior_mean, prior_log_var, post_mean, post_log_var):
    # KL( N(post) || N(prior) ), summed over latent dim, mean over batch.
    kl = 0.5 * (prior_log_var - post_log_var
                + jnp.exp(post_log_var - prior_log_var)
                + jnp.square(post_mean - prior_mean) * jnp.exp(-prior_log_var)
                - 1.0)
    return jnp.mean(jnp.sum(kl, axis=-1))


# ----------------------------------------------------------------------------
# Forward pass
# ----------------------------------------------------------------------------
def anp_forward(packed, context_x, context_y, target_x, target_y, rng):
    B, Nc, x_dim = context_x.shape
    Nt = target_x.shape[1]
    y_dim = context_y.shape[-1]
    hidden_dim = packed["wr"].shape[0]
    latent_dim = packed["wz"].shape[0]
    has_target = target_y is not None

    ctx_xy = jnp.concatenate([context_x, context_y], -1).reshape(B * Nc, x_dim + y_dim)
    if has_target:
        tgt_xy = jnp.concatenate([target_x, target_y], -1).reshape(B * Nt, x_dim + y_dim)
        xy_rows = jnp.concatenate([ctx_xy, tgt_xy], axis=0)     # ctx rows first
    else:
        xy_rows = ctx_xy
    x_rows = jnp.concatenate([target_x.reshape(B * Nt, x_dim),
                              context_x.reshape(B * Nc, x_dim)], axis=0)
    eps = jax.random.normal(rng, (B, latent_dim), jnp.float32)  # single draw

    stats, dec_pad = anp_fused_call(packed, xy_rows, x_rows, eps,
                                    B=B, Nc=Nc, Nt=Nt, latent_dim=latent_dim,
                                    hidden_dim=hidden_dim, has_target=has_target)

    dec_out = dec_pad[:, :2 * y_dim].reshape(B, Nt, 2 * y_dim)
    mean, log_std = jnp.split(dec_out, 2, axis=-1)
    std = 0.1 + 0.9 * jax.nn.softplus(log_std)
    # TODO(synk): torch.distributions.Normal object; represented as (mean, std).
    distrib = (mean, std)

    if has_target:
        # stats rows: [posterior (B) ; prior (B)]
        post_mean, post_log_var = stats[:B, :latent_dim], stats[:B, latent_dim:]
        prior_mean, prior_log_var = stats[B:, :latent_dim], stats[B:, latent_dim:]
        log_prob = gaussian_log_prob(mean, std, target_y)
        kl = kl_div(prior_mean, prior_log_var, post_mean, post_log_var)
        loss = -(log_prob - kl / float(Nt))
    else:
        log_prob = kl = loss = None

    return distrib, mean, std, loss, log_prob, kl


# ----------------------------------------------------------------------------
# Main
# ----------------------------------------------------------------------------
if __name__ == "__main__":
    key = jax.random.PRNGKey(0)
    k_params, k_cx, k_cy, k_tx, k_ty, k_rng = jax.random.split(key, 6)

    # Small shapes consistent with the module: batch=2, context=8, target=8,
    # x_dim=2, y_dim=1, hidden_dim=128, latent_dim=128, layer counts 6/6/4.
    B, Nc, Nt = 2, 8, 8
    x_dim, y_dim = 2, 1
    hidden_dim, latent_dim = 128, 128

    params = init_anp_params(k_params, x_dim, y_dim, latent_dim, hidden_dim,
                             latent_layers=6, det_layers=6, dec_layers=4)
    packed = pack_anp_params(params, x_dim, y_dim, latent_dim, hidden_dim)

    context_x = jax.random.normal(k_cx, (B, Nc, x_dim), jnp.float32)
    context_y = jax.random.normal(k_cy, (B, Nc, y_dim), jnp.float32)
    target_x = jax.random.normal(k_tx, (B, Nt, x_dim), jnp.float32)
    target_y = jax.random.normal(k_ty, (B, Nt, y_dim), jnp.float32)

    fwd = jax.jit(anp_forward)
    distrib, mean, std, loss, log_prob, kl = fwd(
        packed, context_x, context_y, target_x, target_y, k_rng)

    jax.block_until_ready((mean, std, loss, log_prob, kl))
    assert mean.shape == (B, Nt, y_dim) and std.shape == (B, Nt, y_dim)
    assert bool(jnp.all(std > 0.0)) and bool(jnp.isfinite(loss))
    print("KERNEL_OK")
</pallas_src>

<mosaic_0001>
module attributes {stable_mosaic.version = 11 : i64} {
  func.func @_anp_fused_kernel(%arg0: memref<32x3xf32, #tpu.memory_space<vmem>>, %arg1: memref<32x2xf32, #tpu.memory_space<vmem>>, %arg2: memref<2x128xf32, #tpu.memory_space<vmem>>, %arg3: memref<3x128xbf16, #tpu.memory_space<vmem>>, %arg4: memref<5x128x128xbf16, #tpu.memory_space<vmem>>, %arg5: memref<128x128xbf16, #tpu.memory_space<vmem>>, %arg6: memref<128x256xbf16, #tpu.memory_space<vmem>>, %arg7: memref<7x128xf32, #tpu.memory_space<vmem>>, %arg8: memref<1x256xf32, #tpu.memory_space<vmem>>, %arg9: memref<3x128xbf16, #tpu.memory_space<vmem>>, %arg10: memref<5x128x128xbf16, #tpu.memory_space<vmem>>, %arg11: memref<6x128xf32, #tpu.memory_space<vmem>>, %arg12: memref<2x384xbf16, #tpu.memory_space<vmem>>, %arg13: memref<1x384xf32, #tpu.memory_space<vmem>>, %arg14: memref<128x128xbf16, #tpu.memory_space<vmem>>, %arg15: memref<128x128xbf16, #tpu.memory_space<vmem>>, %arg16: memref<2x128x128xbf16, #tpu.memory_space<vmem>>, %arg17: memref<128x128xbf16, #tpu.memory_space<vmem>>, %arg18: memref<4x128xf32, #tpu.memory_space<vmem>>, %arg19: memref<4x256xf32, #tpu.memory_space<vmem>>, %arg20: memref<16x128xf32, #tpu.memory_space<vmem>>) attributes {dimension_semantics = [], scalar_prefetch = 0 : i64, scratch_operands = 0 : i64, tpu.core_type = #tpu.core_type<tc>} {
    %c0 = arith.constant 0 : index
    %c0_0 = arith.constant 0 : index
    %0 = vector.load %arg0[%c0, %c0_0] : memref<32x3xf32, #tpu.memory_space<vmem>>, vector<32x3xf32>
    %c0_1 = arith.constant 0 : index
    %c0_2 = arith.constant 0 : index
    %1 = vector.load %arg7[%c0_1, %c0_2] : memref<7x128xf32, #tpu.memory_space<vmem>>, vector<7x128xf32>
    %c0_3 = arith.constant 0 : index
    %c0_4 = arith.constant 0 : index
    %2 = vector.load %arg3[%c0_3, %c0_4] : memref<3x128xbf16, #tpu.memory_space<vmem>>, vector<3x128xbf16>
    %3 = arith.truncf %0 : vector<32x3xf32> to vector<32x3xbf16>
    %cst = arith.constant dense<0.000000e+00> : vector<32x128xf32>
    %4 = tpu.matmul %3, %2, %cst {dimension_numbers = #tpu.dot_dimension_numbers<[1], [0], [0], [1], [0, 0, 1, 1], [], []>} : vector<32x3xbf16>, vector<3x128xbf16>, vector<32x128xf32> -> vector<32x128xf32>
    %5 = vector.extract_strided_slice %1 {offsets = [0, 0], sizes = [1, 128], strides = [1, 1]} : vector<7x128xf32> to vector<1x128xf32>
    %6 = vector.shape_cast %5 : vector<1x128xf32> to vector<128xf32>
    %7 = vector.shape_cast %6 : vector<128xf32> to vector<1x128xf32>
    %8 = vector.broadcast %7 : vector<1x128xf32> to vector<32x128xf32>
    %9 = arith.addf %4, %8 : vector<32x128xf32>
    %cst_5 = arith.constant 0.000000e+00 : f32
    %10 = vector.broadcast %cst_5 : f32 to vector<32x128xf32>
    %11 = arith.maximumf %9, %10 : vector<32x128xf32>
    %c0_6 = arith.constant 0 : index
    %c0_7 = arith.constant 0 : index
    %c0_8 = arith.constant 0 : index
    %12 = vector.load %arg4[%c0_6, %c0_7, %c0_8] : memref<5x128x128xbf16, #tpu.memory_space<vmem>>, vector<1x128x128xbf16>
    %13 = vector.shape_cast %12 : vector<1x128x128xbf16> to vector<128x128xbf16>
    %14 = arith.truncf %11 : vector<32x128xf32> to vector<32x128xbf16>
    %cst_9 = arith.constant dense<0.000000e+00> : vector<32x128xf32>
    %15 = tpu.matmul %14, %13, %cst_9 {dimension_numbers = #tpu.dot_dimension_numbers<[1], [0], [0], [1], [0, 0, 1, 1], [], []>} : vector<32x128xbf16>, vector<128x128xbf16>, vector<32x128xf32> -> vector<32x128xf32>
    %16 = vector.extract_strided_slice %1 {offsets = [1, 0], sizes = [1, 128], strides = [1, 1]} : vector<7x128xf32> to vector<1x128xf32>
    %17 = vector.shape_cast %16 : vector<1x128xf32> to vector<128xf32>
    %18 = vector.shape_cast %17 : vector<128xf32> to vector<1x128xf32>
    %19 = vector.broadcast %18 : vector<1x128xf32> to vector<32x128xf32>
    %20 = arith.addf %15, %19 : vector<32x128xf32>
    %cst_10 = arith.constant 0.000000e+00 : f32
    %21 = vector.broadcast %cst_10 : f32 to vector<32x128xf32>
    %22 = arith.maximumf %20, %21 : vector<32x128xf32>
    %c1 = arith.constant 1 : index
    %c0_11 = arith.constant 0 : index
    %c0_12 = arith.constant 0 : index
    %23 = vector.load %arg4[%c1, %c0_11, %c0_12] : memref<5x128x128xbf16, #tpu.memory_space<vmem>>, vector<1x128x128xbf16>
    %24 = vector.shape_cast %23 : vector<1x128x128xbf16> to vector<128x128xbf16>
    %25 = arith.truncf %22 : vector<32x128xf32> to vector<32x128xbf16>
    %cst_13 = arith.constant dense<0.000000e+00> : vector<32x128xf32>
    %26 = tpu.matmul %25, %24, %cst_13 {dimension_numbers = #tpu.dot_dimension_numbers<[1], [0], [0], [1], [0, 0, 1, 1], [], []>} : vector<32x128xbf16>, vector<128x128xbf16>, vector<32x128xf32> -> vector<32x128xf32>
    %27 = vector.extract_strided_slice %1 {offsets = [2, 0], sizes = [1, 128], strides = [1, 1]} : vector<7x128xf32> to vector<1x128xf32>
    %28 = vector.shape_cast %27 : vector<1x128xf32> to vector<128xf32>
    %29 = vector.shape_cast %28 : vector<128xf32> to vector<1x128xf32>
    %30 = vector.broadcast %29 : vector<1x128xf32> to vector<32x128xf32>
    %31 = arith.addf %26, %30 : vector<32x128xf32>
    %cst_14 = arith.constant 0.000000e+00 : f32
    %32 = vector.broadcast %cst_14 : f32 to vector<32x128xf32>
    %33 = arith.maximumf %31, %32 : vector<32x128xf32>
    %c2 = arith.constant 2 : index
    %c0_15 = arith.constant 0 : index
    %c0_16 = arith.constant 0 : index
    %34 = vector.load %arg4[%c2, %c0_15, %c0_16] : memref<5x128x128xbf16, #tpu.memory_space<vmem>>, vector<1x128x128xbf16>
    %35 = vector.shape_cast %34 : vector<1x128x128xbf16> to vector<128x128xbf16>
    %36 = arith.truncf %33 : vector<32x128xf32> to vector<32x128xbf16>
    %cst_17 = arith.constant dense<0.000000e+00> : vector<32x128xf32>
    %37 = tpu.matmul %36, %35, %cst_17 {dimension_numbers = #tpu.dot_dimension_numbers<[1], [0], [0], [1], [0, 0, 1, 1], [], []>} : vector<32x128xbf16>, vector<128x128xbf16>, vector<32x128xf32> -> vector<32x128xf32>
    %38 = vector.extract_strided_slice %1 {offsets = [3, 0], sizes = [1, 128], strides = [1, 1]} : vector<7x128xf32> to vector<1x128xf32>
    %39 = vector.shape_cast %38 : vector<1x128xf32> to vector<128xf32>
    %40 = vector.shape_cast %39 : vector<128xf32> to vector<1x128xf32>
    %41 = vector.broadcast %40 : vector<1x128xf32> to vector<32x128xf32>
    %42 = arith.addf %37, %41 : vector<32x128xf32>
    %cst_18 = arith.constant 0.000000e+00 : f32
    %43 = vector.broadcast %cst_18 : f32 to vector<32x128xf32>
    %44 = arith.maximumf %42, %43 : vector<32x128xf32>
    %c3 = arith.constant 3 : index
    %c0_19 = arith.constant 0 : index
    %c0_20 = arith.constant 0 : index
    %45 = vector.load %arg4[%c3, %c0_19, %c0_20] : memref<5x128x128xbf16, #tpu.memory_space<vmem>>, vector<1x128x128xbf16>
    %46 = vector.shape_cast %45 : vector<1x128x128xbf16> to vector<128x128xbf16>
    %47 = arith.truncf %44 : vector<32x128xf32> to vector<32x128xbf16>
    %cst_21 = arith.constant dense<0.000000e+00> : vector<32x128xf32>
    %48 = tpu.matmul %47, %46, %cst_21 {dimension_numbers = #tpu.dot_dimension_numbers<[1], [0], [0], [1], [0, 0, 1, 1], [], []>} : vector<32x128xbf16>, vector<128x128xbf16>, vector<32x128xf32> -> vector<32x128xf32>
    %49 = vector.extract_strided_slice %1 {offsets = [4, 0], sizes = [1, 128], strides = [1, 1]} : vector<7x128xf32> to vector<1x128xf32>
    %50 = vector.shape_cast %49 : vector<1x128xf32> to vector<128xf32>
    %51 = vector.shape_cast %50 : vector<128xf32> to vector<1x128xf32>
    %52 = vector.broadcast %51 : vector<1x128xf32> to vector<32x128xf32>
    %53 = arith.addf %48, %52 : vector<32x128xf32>
    %cst_22 = arith.constant 0.000000e+00 : f32
    %54 = vector.broadcast %cst_22 : f32 to vector<32x128xf32>
    %55 = arith.maximumf %53, %54 : vector<32x128xf32>
    %c4 = arith.constant 4 : index
    %c0_23 = arith.constant 0 : index
    %c0_24 = arith.constant 0 : index
    %56 = vector.load %arg4[%c4, %c0_23, %c0_24] : memref<5x128x128xbf16, #tpu.memory_space<vmem>>, vector<1x128x128xbf16>
    %57 = vector.shape_cast %56 : vector<1x128x128xbf16> to vector<128x128xbf16>
    %58 = arith.truncf %55 : vector<32x128xf32> to vector<32x128xbf16>
    %cst_25 = arith.constant dense<0.000000e+00> : vector<32x128xf32>
    %59 = tpu.matmul %58, %57, %cst_25 {dimension_numbers = #tpu.dot_dimension_numbers<[1], [0], [0], [1], [0, 0, 1, 1], [], []>} : vector<32x128xbf16>, vector<128x128xbf16>, vector<32x128xf32> -> vector<32x128xf32>
    %60 = vector.extract_strided_slice %1 {offsets = [5, 0], sizes = [1, 128], strides = [1, 1]} : vector<7x128xf32> to vector<1x128xf32>
    %61 = vector.shape_cast %60 : vector<1x128xf32> to vector<128xf32>
    %62 = vector.shape_cast %61 : vector<128xf32> to vector<1x128xf32>
    %63 = vector.broadcast %62 : vector<1x128xf32> to vector<32x128xf32>
    %64 = arith.addf %59, %63 : vector<32x128xf32>
    %cst_26 = arith.constant 0.000000e+00 : f32
    %65 = vector.broadcast %cst_26 : f32 to vector<32x128xf32>
    %66 = arith.maximumf %64, %65 : vector<32x128xf32>
    %67 = tpu.iota {dimensions = array<i32: 0>} : vector<4x32xi32>
    %68 = tpu.iota {dimensions = array<i32: 1>} : vector<4x32xi32>
    %cst_27 = arith.constant 0.000000e+00 : f32
    %69 = vector.broadcast %cst_27 : f32 to vector<4x32xf32>
    %c0_i32 = arith.constant 0 : i32
    %70 = vector.broadcast %c0_i32 : i32 to vector<4x32xi32>
    %71 = arith.cmpi eq, %67, %70 : vector<4x32xi32>
    %c16_i32 = arith.constant 16 : i32
    %72 = vector.broadcast %c16_i32 : i32 to vector<4x32xi32>
    %73 = arith.cmpi sge, %68, %72 : vector<4x32xi32>
    %74 = arith.andi %71, %73 : vector<4x32xi1>
    %c24_i32 = arith.constant 24 : i32
    %75 = vector.broadcast %c24_i32 : i32 to vector<4x32xi32>
    %76 = arith.cmpi slt, %68, %75 : vector<4x32xi32>
    %77 = arith.andi %74, %76 : vector<4x32xi1>
    %cst_28 = arith.constant 1.250000e-01 : f32
    %78 = vector.broadcast %cst_28 : f32 to vector<4x32xf32>
    %79 = arith.select %77, %78, %69 : vector<4x32xi1>, vector<4x32xf32>
    %c2_i32 = arith.constant 2 : i32
    %80 = vector.broadcast %c2_i32 : i32 to vector<4x32xi32>
    %81 = arith.cmpi eq, %67, %80 : vector<4x32xi32>
    %c0_i32_29 = arith.constant 0 : i32
    %82 = vector.broadcast %c0_i32_29 : i32 to vector<4x32xi32>
    %83 = arith.cmpi sge, %68, %82 : vector<4x32xi32>
    %84 = arith.andi %81, %83 : vector<4x32xi1>
    %c8_i32 = arith.constant 8 : i32
    %85 = vector.broadcast %c8_i32 : i32 to vector<4x32xi32>
    %86 = arith.cmpi slt, %68, %85 : vector<4x32xi32>
    %87 = arith.andi %84, %86 : vector<4x32xi1>
    %cst_30 = arith.constant 1.250000e-01 : f32
    %88 = vector.broadcast %cst_30 : f32 to vector<4x32xf32>
    %89 = arith.select %87, %88, %79 : vector<4x32xi1>, vector<4x32xf32>
    %c1_i32 = arith.constant 1 : i32
    %90 = vector.broadcast %c1_i32 : i32 to vector<4x32xi32>
    %91 = arith.cmpi eq, %67, %90 : vector<4x32xi32>
    %c24_i32_31 = arith.constant 24 : i32
    %92 = vector.broadcast %c24_i32_31 : i32 to vector<4x32xi32>
    %93 = arith.cmpi sge, %68, %92 : vector<4x32xi32>
    %94 = arith.andi %91, %93 : vector<4x32xi1>
    %c32_i32 = arith.constant 32 : i32
    %95 = vector.broadcast %c32_i32 : i32 to vector<4x32xi32>
    %96 = arith.cmpi slt, %68, %95 : vector<4x32xi32>
    %97 = arith.andi %94, %96 : vector<4x32xi1>
    %cst_32 = arith.constant 1.250000e-01 : f32
    %98 = vector.broadcast %cst_32 : f32 to vector<4x32xf32>
    %99 = arith.select %97, %98, %89 : vector<4x32xi1>, vector<4x32xf32>
    %c3_i32 = arith.constant 3 : i32
    %100 = vector.broadcast %c3_i32 : i32 to vector<4x32xi32>
    %101 = arith.cmpi eq, %67, %100 : vector<4x32xi32>
    %c8_i32_33 = arith.constant 8 : i32
    %102 = vector.broadcast %c8_i32_33 : i32 to vector<4x32xi32>
    %103 = arith.cmpi sge, %68, %102 : vector<4x32xi32>
    %104 = arith.andi %101, %103 : vector<4x32xi1>
    %c16_i32_34 = arith.constant 16 : i32
    %105 = vector.broadcast %c16_i32_34 : i32 to vector<4x32xi32>
    %106 = arith.cmpi slt, %68, %105 : vector<4x32xi32>
    %107 = arith.andi %104, %106 : vector<4x32xi1>
    %cst_35 = arith.constant 1.250000e-01 : f32
    %108 = vector.broadcast %cst_35 : f32 to vector<4x32xf32>
    %109 = arith.select %107, %108, %99 : vector<4x32xi1>, vector<4x32xf32>
    %cst_36 = arith.constant dense<0.000000e+00> : vector<4x128xf32>
    %110 = tpu.matmul %109, %66, %cst_36 {dimension_numbers = #tpu.dot_dimension_numbers<[1], [0], [0], [1], [0, 0, 1, 1], [], []>} : vector<4x32xf32>, vector<32x128xf32>, vector<4x128xf32> -> vector<4x128xf32>
    %c0_37 = arith.constant 0 : index
    %c0_38 = arith.constant 0 : index
    %111 = vector.load %arg5[%c0_37, %c0_38] : memref<128x128xbf16, #tpu.memory_space<vmem>>, vector<128x128xbf16>
    %112 = arith.truncf %110 : vector<4x128xf32> to vector<4x128xbf16>
    %cst_39 = arith.constant dense<0.000000e+00> : vector<4x128xf32>
    %113 = tpu.matmul %112, %111, %cst_39 {dimension_numbers = #tpu.dot_dimension_numbers<[1], [0], [0], [1], [0, 0, 1, 1], [], []>} : vector<4x128xbf16>, vector<128x128xbf16>, vector<4x128xf32> -> vector<4x128xf32>
    %114 = vector.extract_strided_slice %1 {offsets = [6, 0], sizes = [1, 128], strides = [1, 1]} : vector<7x128xf32> to vector<1x128xf32>
    %115 = vector.shape_cast %114 : vector<1x128xf32> to vector<128xf32>
    %116 = vector.shape_cast %115 : vector<128xf32> to vector<1x128xf32>
    %117 = vector.broadcast %116 : vector<1x128xf32> to vector<4x128xf32>
    %118 = arith.addf %113, %117 : vector<4x128xf32>
    %cst_40 = arith.constant 0.000000e+00 : f32
    %119 = vector.broadcast %cst_40 : f32 to vector<4x128xf32>
    %120 = arith.maximumf %118, %119 : vector<4x128xf32>
    %c0_41 = arith.constant 0 : index
    %c0_42 = arith.constant 0 : index
    %121 = vector.load %arg6[%c0_41, %c0_42] : memref<128x256xbf16, #tpu.memory_space<vmem>>, vector<128x256xbf16>
    %122 = arith.truncf %120 : vector<4x128xf32> to vector<4x128xbf16>
    %cst_43 = arith.constant dense<0.000000e+00> : vector<4x256xf32>
    %123 = tpu.matmul %122, %121, %cst_43 {dimension_numbers = #tpu.dot_dimension_numbers<[1], [0], [0], [1], [0, 0, 1, 1], [], []>} : vector<4x128xbf16>, vector<128x256xbf16>, vector<4x256xf32> -> vector<4x256xf32>
    %c0_44 = arith.constant 0 : index
    %c0_45 = arith.constant 0 : index
    %124 = vector.load %arg8[%c0_44, %c0_45] : memref<1x256xf32, #tpu.memory_space<vmem>>, vector<1x256xf32>
    %125 = vector.broadcast %124 : vector<1x256xf32> to vector<4x256xf32>
    %126 = arith.addf %123, %125 : vector<4x256xf32>
    %c0_46 = arith.constant 0 : index
    %c0_47 = arith.constant 0 : index
    %127 = vector.load %arg19[%c0_46, %c0_47] : memref<4x256xf32, #tpu.memory_space<vmem>>, vector<4x256xf32>
    tpu.vector_store %arg19[%c0_46, %c0_47], %126 {strides = array<i32>} : memref<4x256xf32, #tpu.memory_space<vmem>>, vector<4x256xf32>,
    %128 = vector.extract_strided_slice %126 {offsets = [0, 0], sizes = [2, 256], strides = [1, 1]} : vector<4x256xf32> to vector<2x256xf32>
    %129 = vector.extract_strided_slice %128 {offsets = [0, 0], sizes = [2, 128], strides = [1, 1]} : vector<2x256xf32> to vector<2x128xf32>
    %130 = vector.extract_strided_slice %128 {offsets = [0, 128], sizes = [2, 128], strides = [1, 1]} : vector<2x256xf32> to vector<2x128xf32>
    %cst_48 = arith.constant 5.000000e-01 : f32
    %131 = vector.broadcast %cst_48 : f32 to vector<2x128xf32>
    %132 = arith.mulf %131, %130 : vector<2x128xf32>
    %133 = math.exp %132 : vector<2x128xf32>
    %c0_49 = arith.constant 0 : index
    %c0_50 = arith.constant 0 : index
    %134 = vector.load %arg2[%c0_49, %c0_50] : memref<2x128xf32, #tpu.memory_space<vmem>>, vector<2x128xf32>
    %135 = arith.mulf %133, %134 : vector<2x128xf32>
    %136 = arith.addf %129, %135 : vector<2x128xf32>
    %c0_51 = arith.constant 0 : index
    %c0_52 = arith.constant 0 : index
    %137 = vector.load %arg11[%c0_51, %c0_52] : memref<6x128xf32, #tpu.memory_space<vmem>>, vector<6x128xf32>
    %138 = vector.extract_strided_slice %0 {offsets = [0, 0], sizes = [16, 3], strides = [1, 1]} : vector<32x3xf32> to vector<16x3xf32>
    %c0_53 = arith.constant 0 : index
    %c0_54 = arith.constant 0 : index
    %139 = vector.load %arg9[%c0_53, %c0_54] : memref<3x128xbf16, #tpu.memory_space<vmem>>, vector<3x128xbf16>
    %140 = arith.truncf %138 : vector<16x3xf32> to vector<16x3xbf16>
    %cst_55 = arith.constant dense<0.000000e+00> : vector<16x128xf32>
    %141 = tpu.matmul %140, %139, %cst_55 {dimension_numbers = #tpu.dot_dimension_numbers<[1], [0], [0], [1], [0, 0, 1, 1], [], []>} : vector<16x3xbf16>, vector<3x128xbf16>, vector<16x128xf32> -> vector<16x128xf32>
    %142 = vector.extract_strided_slice %137 {offsets = [0, 0], sizes = [1, 128], strides = [1, 1]} : vector<6x128xf32> to vector<1x128xf32>
    %143 = vector.shape_cast %142 : vector<1x128xf32> to vector<128xf32>
    %144 = vector.shape_cast %143 : vector<128xf32> to vector<1x128xf32>
    %145 = vector.broadcast %144 : vector<1x128xf32> to vector<16x128xf32>
    %146 = arith.addf %141, %145 : vector<16x128xf32>
    %cst_56 = arith.constant 0.000000e+00 : f32
    %147 = vector.broadcast %cst_56 : f32 to vector<16x128xf32>
    %148 = arith.maximumf %146, %147 : vector<16x128xf32>
    %c0_57 = arith.constant 0 : index
    %c0_58 = arith.constant 0 : index
    %c0_59 = arith.constant 0 : index
    %149 = vector.load %arg10[%c0_57, %c0_58, %c0_59] : memref<5x128x128xbf16, #tpu.memory_space<vmem>>, vector<1x128x128xbf16>
    %150 = vector.shape_cast %149 : vector<1x128x128xbf16> to vector<128x128xbf16>
    %151 = arith.truncf %148 : vector<16x128xf32> to vector<16x128xbf16>
    %cst_60 = arith.constant dense<0.000000e+00> : vector<16x128xf32>
    %152 = tpu.matmul %151, %150, %cst_60 {dimension_numbers = #tpu.dot_dimension_numbers<[1], [0], [0], [1], [0, 0, 1, 1], [], []>} : vector<16x128xbf16>, vector<128x128xbf16>, vector<16x128xf32> -> vector<16x128xf32>
    %153 = vector.extract_strided_slice %137 {offsets = [1, 0], sizes = [1, 128], strides = [1, 1]} : vector<6x128xf32> to vector<1x128xf32>
    %154 = vector.shape_cast %153 : vector<1x128xf32> to vector<128xf32>
    %155 = vector.shape_cast %154 : vector<128xf32> to vector<1x128xf32>
    %156 = vector.broadcast %155 : vector<1x128xf32> to vector<16x128xf32>
    %157 = arith.addf %152, %156 : vector<16x128xf32>
    %cst_61 = arith.constant 0.000000e+00 : f32
    %158 = vector.broadcast %cst_61 : f32 to vector<16x128xf32>
    %159 = arith.maximumf %157, %158 : vector<16x128xf32>
    %c1_62 = arith.constant 1 : index
    %c0_63 = arith.constant 0 : index
    %c0_64 = arith.constant 0 : index
    %160 = vector.load %arg10[%c1_62, %c0_63, %c0_64] : memref<5x128x128xbf16, #tpu.memory_space<vmem>>, vector<1x128x128xbf16>
    %161 = vector.shape_cast %160 : vector<1x128x128xbf16> to vector<128x128xbf16>
    %162 = arith.truncf %159 : vector<16x128xf32> to vector<16x128xbf16>
    %cst_65 = arith.constant dense<0.000000e+00> : vector<16x128xf32>
    %163 = tpu.matmul %162, %161, %cst_65 {dimension_numbers = #tpu.dot_dimension_numbers<[1], [0], [0], [1], [0, 0, 1, 1], [], []>} : vector<16x128xbf16>, vector<128x128xbf16>, vector<16x128xf32> -> vector<16x128xf32>
    %164 = vector.extract_strided_slice %137 {offsets = [2, 0], sizes = [1, 128], strides = [1, 1]} : vector<6x128xf32> to vector<1x128xf32>
    %165 = vector.shape_cast %164 : vector<1x128xf32> to vector<128xf32>
    %166 = vector.shape_cast %165 : vector<128xf32> to vector<1x128xf32>
    %167 = vector.broadcast %166 : vector<1x128xf32> to vector<16x128xf32>
    %168 = arith.addf %163, %167 : vector<16x128xf32>
    %cst_66 = arith.constant 0.000000e+00 : f32
    %169 = vector.broadcast %cst_66 : f32 to vector<16x128xf32>
    %170 = arith.maximumf %168, %169 : vector<16x128xf32>
    %c2_67 = arith.constant 2 : index
    %c0_68 = arith.constant 0 : index
    %c0_69 = arith.constant 0 : index
    %171 = vector.load %arg10[%c2_67, %c0_68, %c0_69] : memref<5x128x128xbf16, #tpu.memory_space<vmem>>, vector<1x128x128xbf16>
    %172 = vector.shape_cast %171 : vector<1x128x128xbf16> to vector<128x128xbf16>
    %173 = arith.truncf %170 : vector<16x128xf32> to vector<16x128xbf16>
    %cst_70 = arith.constant dense<0.000000e+00> : vector<16x128xf32>
    %174 = tpu.matmul %173, %172, %cst_70 {dimension_numbers = #tpu.dot_dimension_numbers<[1], [0], [0], [1], [0, 0, 1, 1], [], []>} : vector<16x128xbf16>, vector<128x128xbf16>, vector<16x128xf32> -> vector<16x128xf32>
    %175 = vector.extract_strided_slice %137 {offsets = [3, 0], sizes = [1, 128], strides = [1, 1]} : vector<6x128xf32> to vector<1x128xf32>
    %176 = vector.shape_cast %175 : vector<1x128xf32> to vector<128xf32>
    %177 = vector.shape_cast %176 : vector<128xf32> to vector<1x128xf32>
    %178 = vector.broadcast %177 : vector<1x128xf32> to vector<16x128xf32>
    %179 = arith.addf %174, %178 : vector<16x128xf32>
    %cst_71 = arith.constant 0.000000e+00 : f32
    %180 = vector.broadcast %cst_71 : f32 to vector<16x128xf32>
    %181 = arith.maximumf %179, %180 : vector<16x128xf32>
    %c3_72 = arith.constant 3 : index
    %c0_73 = arith.constant 0 : index
    %c0_74 = arith.constant 0 : index
    %182 = vector.load %arg10[%c3_72, %c0_73, %c0_74] : memref<5x128x128xbf16, #tpu.memory_space<vmem>>, vector<1x128x128xbf16>
    %183 = vector.shape_cast %182 : vector<1x128x128xbf16> to vector<128x128xbf16>
    %184 = arith.truncf %181 : vector<16x128xf32> to vector<16x128xbf16>
    %cst_75 = arith.constant dense<0.000000e+00> : vector<16x128xf32>
    %185 = tpu.matmul %184, %183, %cst_75 {dimension_numbers = #tpu.dot_dimension_numbers<[1], [0], [0], [1], [0, 0, 1, 1], [], []>} : vector<16x128xbf16>, vector<128x128xbf16>, vector<16x128xf32> -> vector<16x128xf32>
    %186 = vector.extract_strided_slice %137 {offsets = [4, 0], sizes = [1, 128], strides = [1, 1]} : vector<6x128xf32> to vector<1x128xf32>
    %187 = vector.shape_cast %186 : vector<1x128xf32> to vector<128xf32>
    %188 = vector.shape_cast %187 : vector<128xf32> to vector<1x128xf32>
    %189 = vector.broadcast %188 : vector<1x128xf32> to vector<16x128xf32>
    %190 = arith.addf %185, %189 : vector<16x128xf32>
    %cst_76 = arith.constant 0.000000e+00 : f32
    %191 = vector.broadcast %cst_76 : f32 to vector<16x128xf32>
    %192 = arith.maximumf %190, %191 : vector<16x128xf32>
    %c4_77 = arith.constant 4 : index
    %c0_78 = arith.constant 0 : index
    %c0_79 = arith.constant 0 : index
    %193 = vector.load %arg10[%c4_77, %c0_78, %c0_79] : memref<5x128x128xbf16, #tpu.memory_space<vmem>>, vector<1x128x128xbf16>
    %194 = vector.shape_cast %193 : vector<1x128x128xbf16> to vector<128x128xbf16>
    %195 = arith.truncf %192 : vector<16x128xf32> to vector<16x128xbf16>
    %cst_80 = arith.constant dense<0.000000e+00> : vector<16x128xf32>
    %196 = tpu.matmul %195, %194, %cst_80 {dimension_numbers = #tpu.dot_dimension_numbers<[1], [0], [0], [1], [0, 0, 1, 1], [], []>} : vector<16x128xbf16>, vector<128x128xbf16>, vector<16x128xf32> -> vector<16x128xf32>
    %197 = vector.extract_strided_slice %137 {offsets = [5, 0], sizes = [1, 128], strides = [1, 1]} : vector<6x128xf32> to vector<1x128xf32>
    %198 = vector.shape_cast %197 : vector<1x128xf32> to vector<128xf32>
    %199 = vector.shape_cast %198 : vector<128xf32> to vector<1x128xf32>
    %200 = vector.broadcast %199 : vector<1x128xf32> to vector<16x128xf32>
    %201 = arith.addf %196, %200 : vector<16x128xf32>
    %cst_81 = arith.constant 0.000000e+00 : f32
    %202 = vector.broadcast %cst_81 : f32 to vector<16x128xf32>
    %203 = arith.maximumf %201, %202 : vector<16x128xf32>
    %c0_82 = arith.constant 0 : index
    %c0_83 = arith.constant 0 : index
    %204 = vector.load %arg1[%c0_82, %c0_83] : memref<32x2xf32, #tpu.memory_space<vmem>>, vector<32x2xf32>
    %c0_84 = arith.constant 0 : index
    %c0_85 = arith.constant 0 : index
    %205 = vector.load %arg12[%c0_84, %c0_85] : memref<2x384xbf16, #tpu.memory_space<vmem>>, vector<2x384xbf16>
    %206 = arith.truncf %204 : vector<32x2xf32> to vector<32x2xbf16>
    %cst_86 = arith.constant dense<0.000000e+00> : vector<32x384xf32>
    %207 = tpu.matmul %206, %205, %cst_86 {dimension_numbers = #tpu.dot_dimension_numbers<[1], [0], [0], [1], [0, 0, 1, 1], [], []>} : vector<32x2xbf16>, vector<2x384xbf16>, vector<32x384xf32> -> vector<32x384xf32>
    %c0_87 = arith.constant 0 : index
    %c0_88 = arith.constant 0 : index
    %208 = vector.load %arg13[%c0_87, %c0_88] : memref<1x384xf32, #tpu.memory_space<vmem>>, vector<1x384xf32>
    %209 = vector.broadcast %208 : vector<1x384xf32> to vector<32x384xf32>
    %210 = arith.addf %207, %209 : vector<32x384xf32>
    %211 = vector.extract_strided_slice %210 {offsets = [0, 0], sizes = [16, 128], strides = [1, 1]} : vector<32x384xf32> to vector<16x128xf32>
    %212 = vector.extract_strided_slice %210 {offsets = [16, 128], sizes = [16, 128], strides = [1, 1]} : vector<32x384xf32> to vector<16x128xf32>
    %213 = vector.extract_strided_slice %210 {offsets = [0, 256], sizes = [16, 128], strides = [1, 1]} : vector<32x384xf32> to vector<16x128xf32>
    %214 = arith.truncf %211 : vector<16x128xf32> to vector<16x128xbf16>
    %215 = arith.truncf %212 : vector<16x128xf32> to vector<16x128xbf16>
    %cst_89 = arith.constant dense<0.000000e+00> : vector<16x16xf32>
    %216 = tpu.matmul %214, %215, %cst_89 {dimension_numbers = #tpu.dot_dimension_numbers<[1], [1], [0], [0], [0, 0, 1, 0], [], []>} : vector<16x128xbf16>, vector<16x128xbf16>, vector<16x16xf32> -> vector<16x16xf32>
    %217 = tpu.iota {dimensions = array<i32: 0>} : vector<16x16xi32>
    %218 = tpu.iota {dimensions = array<i32: 1>} : vector<16x16xi32>
    %c0_i32_90 = arith.constant 0 : i32
    %219 = vector.broadcast %c0_i32_90 : i32 to vector<16x16xi32>
    %220 = arith.cmpi sge, %217, %219 : vector<16x16xi32>
    %c8_i32_91 = arith.constant 8 : i32
    %221 = vector.broadcast %c8_i32_91 : i32 to vector<16x16xi32>
    %222 = arith.cmpi slt, %217, %221 : vector<16x16xi32>
    %223 = arith.andi %220, %222 : vector<16x16xi1>
    %c0_i32_92 = arith.constant 0 : i32
    %224 = vector.broadcast %c0_i32_92 : i32 to vector<16x16xi32>
    %225 = arith.cmpi sge, %218, %224 : vector<16x16xi32>
    %226 = arith.andi %223, %225 : vector<16x16xi1>
    %c8_i32_93 = arith.constant 8 : i32
    %227 = vector.broadcast %c8_i32_93 : i32 to vector<16x16xi32>
    %228 = arith.cmpi slt, %218, %227 : vector<16x16xi32>
    %229 = arith.andi %226, %228 : vector<16x16xi1>
    %c8_i32_94 = arith.constant 8 : i32
    %230 = vector.broadcast %c8_i32_94 : i32 to vector<16x16xi32>
    %231 = arith.cmpi sge, %217, %230 : vector<16x16xi32>
    %c16_i32_95 = arith.constant 16 : i32
    %232 = vector.broadcast %c16_i32_95 : i32 to vector<16x16xi32>
    %233 = arith.cmpi slt, %217, %232 : vector<16x16xi32>
    %234 = arith.andi %231, %233 : vector<16x16xi1>
    %c8_i32_96 = arith.constant 8 : i32
    %235 = vector.broadcast %c8_i32_96 : i32 to vector<16x16xi32>
    %236 = arith.cmpi sge, %218, %235 : vector<16x16xi32>
    %237 = arith.andi %234, %236 : vector<16x16xi1>
    %c16_i32_97 = arith.constant 16 : i32
    %238 = vector.broadcast %c16_i32_97 : i32 to vector<16x16xi32>
    %239 = arith.cmpi slt, %218, %238 : vector<16x16xi32>
    %240 = arith.andi %237, %239 : vector<16x16xi1>
    %241 = arith.ori %229, %240 : vector<16x16xi1>
    %cst_98 = arith.constant -1.000000e+30 : f32
    %242 = vector.broadcast %cst_98 : f32 to vector<16x16xf32>
    %243 = arith.select %241, %216, %242 : vector<16x16xi1>, vector<16x16xf32>
    %cst_99 = arith.constant dense<0xFF800000> : vector<16xf32>
    %244 = vector.multi_reduction <maximumf>, %243, %cst_99 [1] : vector<16x16xf32> to vector<16xf32>
    %245 = vector.shape_cast %244 : vector<16xf32> to vector<16x1xf32>
    %246 = vector.broadcast %245 : vector<16x1xf32> to vector<16x16xf32>
    %247 = arith.subf %243, %246 : vector<16x16xf32>
    %248 = math.exp %247 : vector<16x16xf32>
    %cst_100 = arith.constant dense<0.000000e+00> : vector<16xf32>
    %249 = vector.multi_reduction <add>, %248, %cst_100 [1] : vector<16x16xf32> to vector<16xf32>
    %250 = vector.shape_cast %249 : vector<16xf32> to vector<16x1xf32>
    %251 = tpu.reciprocal %250 {approx = true} : vector<16x1xf32> -> vector<16x1xf32>
    %252 = vector.broadcast %251 : vector<16x1xf32> to vector<16x16xf32>
    %253 = arith.mulf %248, %252 : vector<16x16xf32>
    %254 = arith.truncf %253 : vector<16x16xf32> to vector<16x16xbf16>
    %255 = arith.truncf %203 : vector<16x128xf32> to vector<16x128xbf16>
    %cst_101 = arith.constant dense<0.000000e+00> : vector<16x128xf32>
    %256 = tpu.matmul %254, %255, %cst_101 {dimension_numbers = #tpu.dot_dimension_numbers<[1], [0], [0], [1], [0, 0, 1, 1], [], []>} : vector<16x16xbf16>, vector<16x128xbf16>, vector<16x128xf32> -> vector<16x128xf32>
    %c0_102 = arith.constant 0 : index
    %c0_103 = arith.constant 0 : index
    %257 = vector.load %arg18[%c0_102, %c0_103] : memref<4x128xf32, #tpu.memory_space<vmem>>, vector<4x128xf32>
    %c0_104 = arith.constant 0 : index
    %c0_105 = arith.constant 0 : index
    %258 = vector.load %arg15[%c0_104, %c0_105] : memref<128x128xbf16, #tpu.memory_space<vmem>>, vector<128x128xbf16>
    %259 = arith.truncf %136 : vector<2x128xf32> to vector<2x128xbf16>
    %cst_106 = arith.constant dense<0.000000e+00> : vector<2x128xf32>
    %260 = tpu.matmul %259, %258, %cst_106 {dimension_numbers = #tpu.dot_dimension_numbers<[1], [0], [0], [1], [0, 0, 1, 1], [], []>} : vector<2x128xbf16>, vector<128x128xbf16>, vector<2x128xf32> -> vector<2x128xf32>
    %261 = tpu.iota {dimensions = array<i32: 0>} : vector<16x128xi32>
    %cst_107 = arith.constant 0.000000e+00 : f32
    %262 = vector.broadcast %cst_107 : f32 to vector<16x128xf32>
    %c0_i32_108 = arith.constant 0 : i32
    %263 = vector.broadcast %c0_i32_108 : i32 to vector<16x128xi32>
    %264 = arith.cmpi sge, %261, %263 : vector<16x128xi32>
    %c8_i32_109 = arith.constant 8 : i32
    %265 = vector.broadcast %c8_i32_109 : i32 to vector<16x128xi32>
    %266 = arith.cmpi slt, %261, %265 : vector<16x128xi32>
    %267 = arith.andi %264, %266 : vector<16x128xi1>
    %268 = vector.extract_strided_slice %260 {offsets = [0, 0], sizes = [1, 128], strides = [1, 1]} : vector<2x128xf32> to vector<1x128xf32>
    %269 = vector.shape_cast %268 : vector<1x128xf32> to vector<1x128xf32>
    %270 = vector.broadcast %269 : vector<1x128xf32> to vector<16x128xf32>
    %271 = arith.select %267, %270, %262 : vector<16x128xi1>, vector<16x128xf32>
    %c8_i32_110 = arith.constant 8 : i32
    %272 = vector.broadcast %c8_i32_110 : i32 to vector<16x128xi32>
    %273 = arith.cmpi sge, %261, %272 : vector<16x128xi32>
    %c16_i32_111 = arith.constant 16 : i32
    %274 = vector.broadcast %c16_i32_111 : i32 to vector<16x128xi32>
    %275 = arith.cmpi slt, %261, %274 : vector<16x128xi32>
    %276 = arith.andi %273, %275 : vector<16x128xi1>
    %277 = vector.extract_strided_slice %260 {offsets = [1, 0], sizes = [1, 128], strides = [1, 1]} : vector<2x128xf32> to vector<1x128xf32>
    %278 = vector.shape_cast %277 : vector<1x128xf32> to vector<1x128xf32>
    %279 = vector.broadcast %278 : vector<1x128xf32> to vector<16x128xf32>
    %280 = arith.select %276, %279, %271 : vector<16x128xi1>, vector<16x128xf32>
    %c0_112 = arith.constant 0 : index
    %c0_113 = arith.constant 0 : index
    %281 = vector.load %arg14[%c0_112, %c0_113] : memref<128x128xbf16, #tpu.memory_space<vmem>>, vector<128x128xbf16>
    %282 = arith.truncf %256 : vector<16x128xf32> to vector<16x128xbf16>
    %cst_114 = arith.constant dense<0.000000e+00> : vector<16x128xf32>
    %283 = tpu.matmul %282, %281, %cst_114 {dimension_numbers = #tpu.dot_dimension_numbers<[1], [0], [0], [1], [0, 0, 1, 1], [], []>} : vector<16x128xbf16>, vector<128x128xbf16>, vector<16x128xf32> -> vector<16x128xf32>
    %284 = arith.addf %283, %280 : vector<16x128xf32>
    %285 = arith.addf %284, %213 : vector<16x128xf32>
    %286 = vector.extract_strided_slice %257 {offsets = [0, 0], sizes = [1, 128], strides = [1, 1]} : vector<4x128xf32> to vector<1x128xf32>
    %287 = vector.shape_cast %286 : vector<1x128xf32> to vector<128xf32>
    %288 = vector.shape_cast %287 : vector<128xf32> to vector<1x128xf32>
    %289 = vector.broadcast %288 : vector<1x128xf32> to vector<16x128xf32>
    %290 = arith.addf %285, %289 : vector<16x128xf32>
    %cst_115 = arith.constant 0.000000e+00 : f32
    %291 = vector.broadcast %cst_115 : f32 to vector<16x128xf32>
    %292 = arith.maximumf %290, %291 : vector<16x128xf32>
    %c0_116 = arith.constant 0 : index
    %c0_117 = arith.constant 0 : index
    %c0_118 = arith.constant 0 : index
    %293 = vector.load %arg16[%c0_116, %c0_117, %c0_118] : memref<2x128x128xbf16, #tpu.memory_space<vmem>>, vector<1x128x128xbf16>
    %294 = vector.shape_cast %293 : vector<1x128x128xbf16> to vector<128x128xbf16>
    %295 = arith.truncf %292 : vector<16x128xf32> to vector<16x128xbf16>
    %cst_119 = arith.constant dense<0.000000e+00> : vector<16x128xf32>
    %296 = tpu.matmul %295, %294, %cst_119 {dimension_numbers = #tpu.dot_dimension_numbers<[1], [0], [0], [1], [0, 0, 1, 1], [], []>} : vector<16x128xbf16>, vector<128x128xbf16>, vector<16x128xf32> -> vector<16x128xf32>
    %297 = vector.extract_strided_slice %257 {offsets = [1, 0], sizes = [1, 128], strides = [1, 1]} : vector<4x128xf32> to vector<1x128xf32>
    %298 = vector.shape_cast %297 : vector<1x128xf32> to vector<128xf32>
    %299 = vector.shape_cast %298 : vector<128xf32> to vector<1x128xf32>
    %300 = vector.broadcast %299 : vector<1x128xf32> to vector<16x128xf32>
    %301 = arith.addf %296, %300 : vector<16x128xf32>
    %cst_120 = arith.constant 0.000000e+00 : f32
    %302 = vector.broadcast %cst_120 : f32 to vector<16x128xf32>
    %303 = arith.maximumf %301, %302 : vector<16x128xf32>
    %c1_121 = arith.constant 1 : index
    %c0_122 = arith.constant 0 : index
    %c0_123 = arith.constant 0 : index
    %304 = vector.load %arg16[%c1_121, %c0_122, %c0_123] : memref<2x128x128xbf16, #tpu.memory_space<vmem>>, vector<1x128x128xbf16>
    %305 = vector.shape_cast %304 : vector<1x128x128xbf16> to vector<128x128xbf16>
    %306 = arith.truncf %303 : vector<16x128xf32> to vector<16x128xbf16>
    %cst_124 = arith.constant dense<0.000000e+00> : vector<16x128xf32>
    %307 = tpu.matmul %306, %305, %cst_124 {dimension_numbers = #tpu.dot_dimension_numbers<[1], [0], [0], [1], [0, 0, 1, 1], [], []>} : vector<16x128xbf16>, vector<128x128xbf16>, vector<16x128xf32> -> vector<16x128xf32>
    %308 = vector.extract_strided_slice %257 {offsets = [2, 0], sizes = [1, 128], strides = [1, 1]} : vector<4x128xf32> to vector<1x128xf32>
    %309 = vector.shape_cast %308 : vector<1x128xf32> to vector<128xf32>
    %310 = vector.shape_cast %309 : vector<128xf32> to vector<1x128xf32>
    %311 = vector.broadcast %310 : vector<1x128xf32> to vector<16x128xf32>
    %312 = arith.addf %307, %311 : vector<16x128xf32>
    %cst_125 = arith.constant 0.000000e+00 : f32
    %313 = vector.broadcast %cst_125 : f32 to vector<16x128xf32>
    %314 = arith.maximumf %312, %313 : vector<16x128xf32>
    %c0_126 = arith.constant 0 : index
    %c0_127 = arith.constant 0 : index
    %315 = vector.load %arg17[%c0_126, %c0_127] : memref<128x128xbf16, #tpu.memory_space<vmem>>, vector<128x128xbf16>
    %316 = arith.truncf %314 : vector<16x128xf32> to vector<16x128xbf16>
    %cst_128 = arith.constant dense<0.000000e+00> : vector<16x128xf32>
    %317 = tpu.matmul %316, %315, %cst_128 {dimension_numbers = #tpu.dot_dimension_numbers<[1], [0], [0], [1], [0, 0, 1, 1], [], []>} : vector<16x128xbf16>, vector<128x128xbf16>, vector<16x128xf32> -> vector<16x128xf32>
    %318 = vector.extract_strided_slice %257 {offsets = [3, 0], sizes = [1, 128], strides = [1, 1]} : vector<4x128xf32> to vector<1x128xf32>
    %319 = vector.shape_cast %318 : vector<1x128xf32> to vector<128xf32>
    %320 = vector.shape_cast %319 : vector<128xf32> to vector<1x128xf32>
    %321 = vector.broadcast %320 : vector<1x128xf32> to vector<16x128xf32>
    %322 = arith.addf %317, %321 : vector<16x128xf32>
    %c0_129 = arith.constant 0 : index
    %c0_130 = arith.constant 0 : index
    %323 = vector.load %arg20[%c0_129, %c0_130] : memref<16x128xf32, #tpu.memory_space<vmem>>, vector<16x128xf32>
    tpu.vector_store %arg20[%c0_129, %c0_130], %322 {strides = array<i32>} : memref<16x128xf32, #tpu.memory_space<vmem>>, vector<16x128xf32>,
    return
  }
}

</mosaic_0001>

<bundles_post_ra>
// kernel: anp_forward.1
= control target key start
LH: loop header
LB: loop body
LE: loop exit
PB: predicated region body
PF: predicated region fallthrough
CT: control target
= control target key end

     0   :  { %s4266_s0 = inlined_call_operand.vmem [shape: f32[32,3], index: 0, kind: input, shape index: {}]   ;;  %s4267_s1 = inlined_call_operand.vmem [shape: f32[32,2], index: 1, kind: input, shape index: {}]   ;;  %s4268_s2 = inlined_call_operand.vmem [shape: f32[2,128], index: 2, kind: input, shape index: {}]   ;;  %s4269_s3 = inlined_call_operand.vmem [shape: bf16[3,128], index: 3, kind: input, shape index: {}]   ;;  %s4270_s4 = inlined_call_operand.hbm [shape: bf16[5,128,128], index: 4, kind: input, shape index: {}]   ;;  %s4271_s5 = inlined_call_operand.vmem [shape: bf16[128,128], index: 5, kind: input, shape index: {}]   ;;  %s4272_s6 = inlined_call_operand.vmem [shape: bf16[128,256], index: 6, kind: input, shape index: {}]   ;;  %s4273_s7 = inlined_call_operand.vmem [shape: f32[7,128], index: 7, kind: input, shape index: {}]   ;;  %s4274_s8 = inlined_call_operand.vmem [shape: f32[1,256], index: 8, kind: input, shape index: {}]   ;;  %s4275_s9 = inlined_call_operand.vmem [shape: bf16[3,128], index: 9, kind: input, shape index: {}]   ;;  %s4276_s10 = inlined_call_operand.hbm [shape: bf16[5,128,128], index: 10, kind: input, shape index: {}]   ;;  %s4277_s11 = inlined_call_operand.vmem [shape: f32[6,128], index: 11, kind: input, shape index: {}]   ;;  %s4278_s12 = inlined_call_operand.vmem [shape: bf16[2,384], index: 12, kind: input, shape index: {}]   ;;  %s4279_s13 = inlined_call_operand.vmem [shape: f32[1,384], index: 13, kind: input, shape index: {}]   ;;  %s4280_s14 = inlined_call_operand.hbm [shape: bf16[128,128], index: 14, kind: input, shape index: {}]   ;;  %s4281_s15 = inlined_call_operand.hbm [shape: bf16[128,128], index: 15, kind: input, shape index: {}]   ;;  %s4282_s16 = inlined_call_operand.hbm [shape: bf16[2,128,128], index: 16, kind: input, shape index: {}]   ;;  %s4283_s17 = inlined_call_operand.hbm [shape: bf16[128,128], index: 17, kind: input, shape index: {}]   ;;  %s4284_s18 = inlined_call_operand.vmem [shape: f32[4,128], index: 18, kind: input, shape index: {}]   ;;  %s4285_s19 = inlined_call_operand.vmem [shape: f32[4,256], index: 19, kind: output, shape index: {0}]   ;;  %s4286_s20 = inlined_call_operand.vmem [shape: f32[16,128], index: 20, kind: output, shape index: {1}]  }
   0x1   :  { %4289 = sst [smem:[#allocation16_spill]] %s4266_s0 }
   0x2   :  { %4290 = sst [smem:[#allocation17_spill]] %s4267_s1 }
   0x3   :  { %4291 = sst [smem:[#allocation18_spill]] %s4268_s2 }
   0x4   :  { %4292 = sst [smem:[#allocation19_spill]] %s4269_s3 }
   0x5   :  { %4293 = sst [smem:[#allocation20_spill]] %s4270_s4 }
   0x6   :  { %26 = vsyncpa [#allocation3], 0 }
   0x7   :  { %27 = vsyncpa [#allocation5], 0 }
   0x8   :  { %28 = vsyncpa [#allocation8], 0 }
   0x9   :  { %29 = vsyncpa [#allocation11], 0  ;;  %s3700_s1 = smov [#allocation4]   ;;  %s3701_s23 = smov [#allocation7]  }
   0xa   :  { %s65_s22 = sshll.u32 %s3700_s1, 4  ;;  %s95_s24 = sshll.u32 %s3701_s23, 4  ;;  %s66_s22 = int_to_ptr.vmem [resolvable:$true] %s65_s22  ;;  %s96_s24 = int_to_ptr.vmem [resolvable:$true] %s95_s24 }
   0xb   :  { %s3580_s2 = scalar_lea.vmem %s66_s22, 5120  ;;  %p3585_p1 = scmp.lt.s32.totalorder %s66_s22, %s66_s22 }
   0xc   :  { %p3581_p0 = scmp.ne.s32.totalorder %s66_s22, %s3580_s2  ;;  %p3586_p2 = scmp.lt.s32.totalorder %s3580_s2, %s3580_s2 }
   0xe   :  { %p3587_p3 = por %p3586_p2, %p3585_p1 }
  0x10   :  { %p3588_p4 = pnand %p3587_p3, %p3581_p0 }
  0x12   :  { %3591 = shalt.err (!%p3588_p4)
}
  0x13   :  { %s3702_s25 = smov 64   ;;  %s3703_s3 = smov 4  }
  0x14   :  { %71 = dma.hbm_to_vmem [thread:$0]  %s4276_s10, 5120, %s66_s22, [#allocation5], %s3702_s25, %s3702_s25, %s3703_s3  }
  0x15   :  { %s3600_s28 = scalar_lea.vmem %s96_s24, 1024  ;;  %p3605_p6 = scmp.lt.s32.totalorder %s96_s24, %s96_s24 }
  0x16   :  { %p3601_p5 = scmp.ne.s32.totalorder %s96_s24, %s3600_s28  ;;  %p3606_p7 = scmp.lt.s32.totalorder %s3600_s28, %s3600_s28 }
  0x18   :  { %p3607_p8 = por %p3606_p7, %p3605_p6 }
  0x1a   :  { %p3608_p9 = pnand %p3607_p8, %p3601_p5 }
  0x1c   :  { %3611 = shalt.err (!%p3608_p9)
}
  0x1d   :  { %101 = dma.hbm_to_vmem [thread:$0]  %s4281_s15, 1024, %s96_s24, [#allocation8], %s3702_s25, %s3702_s25, %s3703_s3  }
  0x1e   :  { %s3704_s30 = smov [#allocation2]   ;;  %s3705_s21 = smov [#allocation6]  }
  0x1f   :  { %s43_s0 = sshll.u32 %s3704_s30, 4  ;;  %s83_s1 = sshll.u32 %s3705_s21, 4  ;;  %s44_s0 = int_to_ptr.vmem [resolvable:$true] %s43_s0  ;;  %s84_s1 = int_to_ptr.vmem [resolvable:$true] %s83_s1 }
  0x20   :  { %s3620_s10 = scalar_lea.vmem %s44_s0, 5120  ;;  %p3625_p11 = scmp.lt.s32.totalorder %s44_s0, %s44_s0 }
  0x21   :  { %p3621_p10 = scmp.ne.s32.totalorder %s44_s0, %s3620_s10  ;;  %p3626_p12 = scmp.lt.s32.totalorder %s3620_s10, %s3620_s10 }
  0x23   :  { %p3627_p13 = por %p3626_p12, %p3625_p11 }
  0x25   :  { %p3628_p0 = pnand %p3627_p13, %p3621_p10 }
  0x27   :  { %3631 = shalt.err (!%p3628_p0)
}
  0x28   :  { %s4294_s2 = sld [smem:[#allocation20_spill]]  ;;  %s3640_s15 = scalar_lea.vmem %s84_s1, 1024 }
  0x29   :  { %p3641_p1 = scmp.ne.s32.totalorder %s84_s1, %s3640_s15  ;;  %p3645_p2 = scmp.lt.s32.totalorder %s84_s1, %s84_s1 }
  0x2a   :  { %p3646_p3 = scmp.lt.s32.totalorder %s3640_s15, %s3640_s15 }
  0x2c   :  { %p3647_p4 = por %p3646_p3, %p3645_p2 }
  0x2e   :  { %49 = dma.hbm_to_vmem [thread:$0]  %s4294_s2, 5120, %s44_s0, [#allocation3], %s3702_s25, %s3702_s25, %s3703_s3  }
  0x2f   :  { %p3648_p5 = pnand %p3647_p4, %p3641_p1 }
  0x31   :  { %3651 = shalt.err (!%p3648_p5)
}
  0x32   :  { %89 = dma.hbm_to_vmem [thread:$0]  %s4280_s14, 1024, %s84_s1, [#allocation5], %s3702_s25, %s3702_s25, %s3703_s3  }
  0x33   :  { %s3706_s27 = smov [#allocation9]   ;;  %s3707_s4 = smov [#allocation10]  }
  0x34   :  { %s107_s28 = sshll.u32 %s3706_s27, 4  ;;  %s119_s29 = sshll.u32 %s3707_s4, 4  ;;  %s108_s28 = int_to_ptr.vmem [resolvable:$true] %s107_s28  ;;  %s120_s29 = int_to_ptr.vmem [resolvable:$true] %s119_s29 }
  0x35   :  { %s3660_s30 = scalar_lea.vmem %s108_s28, 2048  ;;  %p3665_p7 = scmp.lt.s32.totalorder %s108_s28, %s108_s28 }
  0x36   :  { %p3661_p6 = scmp.ne.s32.totalorder %s108_s28, %s3660_s30  ;;  %p3666_p8 = scmp.lt.s32.totalorder %s3660_s30, %s3660_s30 }
  0x38   :  { %p3667_p9 = por %p3666_p8, %p3665_p7 }
  0x3a   :  { %p3668_p10 = pnand %p3667_p9, %p3661_p6 }
  0x3c   :  { %3671 = shalt.err (!%p3668_p10)
}
  0x3d   :  { %113 = dma.hbm_to_vmem [thread:$0]  %s4282_s16, 2048, %s108_s28, [#allocation8], %s3702_s25, %s3702_s25, %s3703_s3  }
  0x3e   :  { %s3680_s14 = scalar_lea.vmem %s120_s29, 1024  ;;  %p3685_p12 = scmp.lt.s32.totalorder %s120_s29, %s120_s29 }
  0x3f   :  { %p3681_p11 = scmp.ne.s32.totalorder %s120_s29, %s3680_s14  ;;  %p3686_p13 = scmp.lt.s32.totalorder %s3680_s14, %s3680_s14 }
  0x41   :  { %p3687_p0 = por %p3686_p13, %p3685_p12 }
  0x43   :  { %p3688_p1 = pnand %p3687_p0, %p3681_p11 }
  0x45   :  { %3691 = shalt.err (!%p3688_p1)
}
  0x46   :  { %125 = dma.hbm_to_vmem [thread:$0]  %s4283_s17, 1024, %s120_s29, [#allocation11], %s3702_s25, %s3702_s25, %s3703_s3  }
  0x47   :  { %3692 = dma.done.wait [#allocation3], 5120  }
  0x48   :  { %3693 = vsyncadd [#allocation3], 4294962176 }
  0x49   :  { %3694 = dma.done.wait [#allocation5], 6144  }
  0x4a   :  { %3695 = vsyncadd [#allocation5], 4294961152 }
  0x4b   :  { %3696 = dma.done.wait [#allocation8], 3072  }
  0x4c   :  { %3697 = vsyncadd [#allocation8], 4294964224 }
  0x4d   :  { %3698 = dma.done.wait [#allocation11], 1024  }
  0x4e   :  { %3699 = vsyncadd [#allocation11], 4294966272  ;;  %vm166_vm0 = vcmask 1040384   ;;  %vm167_vm1 = vcmask 1041408   ;;  %v3708_v0 = vmov 65535   ;;  %s4295_s23 = sld [smem:[#allocation19_spill]]  ;;  %v155_v24 = vlaneseq }
  0x4f   :  { %v168_v1 = vsel %vm166_vm0, 4294967295, %v3708_v0  ;;  %s4296_s3 = sld [smem:[#allocation16_spill]]  ;;  %vm159_vm2 = vcmask 23552   ;;  %v3410_v10 = vld [vmem:[#allocation2 + $0x38] sm:$0xff]   ;;  %v3411_v12 = vld [vmem:[#allocation2 + $0x30] sm:$0xff]   ;;  %v3412_v13 = vld [vmem:[#allocation2 + $0x28] sm:$0xff]  }
  0x50   :  { %v3855_v2 = vsel %vm167_vm1, %v168_v1, 0  ;;  %v3413_v14 = vld [vmem:[#allocation2 + $0x20] sm:$0xff]   ;;  %v3414_v15 = vld [vmem:[#allocation2 + $0x18] sm:$0xff]   ;;  %v3415_v16 = vld [vmem:[#allocation2 + $0x10] sm:$0xff]   ;;  %v3879_v25 = vshrl.u32 %v155_v24, 7  ;;  %vm3710_vm3 = vmmov 0  }
  0x51   :  { %v3416_v17 = vld [vmem:[#allocation2 + $0x8] sm:$0xff]   ;;  %v3417_v18 = vld [vmem:[#allocation2] sm:$0xff]   ;;  %v3418_v19 = vld [vmem:[#allocation2 + $0x78] sm:$0xff]   ;;  %s4299_s17 = sld [smem:[#allocation18_spill]] }
  0x52   :  { %v3419_v20 = vld [vmem:[#allocation2 + $0x70] sm:$0xff]   ;;  %3061 = vmatprep.subr.bf16.mxu0 %v3418_v19  ;;  %v3420_v21 = vld [vmem:[#allocation2 + $0x68] sm:$0xff]   ;;  %v3421_v22 = vld [vmem:[#allocation2 + $0x60] sm:$0xff]   ;;  %v3882_v26 = vsub.s32 0, %v3879_v25  ;;  %v3892_v51 = vsub.s32 1, %v3879_v25  ;;  %vm849_vm4 = vcmp.eq.s32.totalorder %v3879_v25, 0 }
  0x53   :  { %3062 = vmatpush3.bf16.msra.mxu0 %v3418_v19  ;;  %v3422_v23 = vld [vmem:[#allocation2 + $0x58] sm:$0xff]   ;;  %v3887_v27 = vld [vmem:[%s4273_s7] sm:$0x7f]  ;;  %v3423_v43 = vld [vmem:[#allocation2 + $0x50] sm:$0xff]   ;;  %vm861_vm8 = vcmp.eq.s32.totalorder %v3879_v25, 1  ;;  %vm855_vm11 = vcmp.eq.s32.totalorder %v3879_v25, 2 }
  0x54   :  { %v152_v3 = vld [vmem:[%s4295_s23] sm:$0x3]  ;;  %3063 = vmatprep.subr.bf16.mxu0 %v3419_v20  ;;  %v158_v29 = vrot.slane %v3887_v27, %v3882_v26  ;;  %v3424_v44 = vld [vmem:[#allocation2 + $0x48] sm:$0xff]   ;;  %v3426_v46 = vld [vmem:[#allocation2 + $0xb8] sm:$0xff]   ;;  %v247_v53 = vrot.slane %v3887_v27, %v3892_v51  ;;  %vm867_vm1 = vcmp.eq.s32.totalorder %v3879_v25, 3  ;;  %s4300_s2 = sld [smem:[#allocation17_spill]] }
  0x55   :  { %v147_v4 = vld [vmem:[%s4296_s3] sm:$0xff]  ;;  %v171_v5 = vand.u32 %v3855_v2, %v152_v3  ;;  %v148_v6 = vld [vmem:[%s4296_s3 + $0x8] sm:$0xff]  ;;  %v149_v7 = vld [vmem:[%s4296_s3 + $0x10] sm:$0xff] }
  0x56   :  { %v150_v8 = vld [vmem:[%s4296_s3 + $0x18] sm:$0xff]  ;;  %v3873_v9 = vpack.c.bf16 %v148_v6, %v147_v4  ;;  %v3425_v45 = vld [vmem:[#allocation2 + $0x40] sm:$0xff]   ;;  %v3427_v47 = vld [vmem:[#allocation2 + $0xb0] sm:$0xff]  }
  0x57   :  { %3035 = vmatprep.subr.bf16.mxu1 %v171_v5  ;;  %v154_v11 = vpack.c.bf16 %v150_v8, %v149_v7  ;;  %3064 = vmatpush3.bf16.msra.mxu0 %v3419_v20  ;;  %v3428_v48 = vld [vmem:[#allocation2 + $0xa8] sm:$0xff]   ;;  %v3429_v49 = vld [vmem:[#allocation2 + $0xa0] sm:$0xff]   ;;  %v3430_v50 = vld [vmem:[#allocation2 + $0x98] sm:$0xff]  }
  0x58   :  { %3036 = vmatpush3.bf16.msra.mxu1 %v171_v5  ;;  %3037 = vmatprep.mubr.msk.bf16.mxu1 %vm159_vm2, %v3873_v9  ;;  %v3431_v4 = vld [vmem:[#allocation2 + $0x90] sm:$0xff]   ;;  %v3432_v5 = vld [vmem:[#allocation2 + $0x88] sm:$0xff]   ;;  %v3433_v6 = vld [vmem:[#allocation2 + $0x80] sm:$0xff]  }
  0x59   :  { %3041 = vmatprep.subr.bf16.mxu1 %v3410_v10  ;;  %3065 = vmatprep.subr.bf16.mxu0 %v3420_v21  ;;  %v3434_v7 = vld [vmem:[#allocation2 + $0xf8] sm:$0xff]   ;;  %v3435_v8 = vld [vmem:[#allocation2 + $0xf0] sm:$0xff]  }
  0x5b   :  { %3038 = vmatmul.mubr.msk.bf16.vlgmr.msra.gmra.mxu1 %vm159_vm2, %v154_v11  ;;  %3066 = vmatpush3.bf16.msra.mxu0 %v3420_v21  ;;  %v3437_v11 = vld [vmem:[#allocation2 + $0xe0] sm:$0xff]  }
  0x5c   :  { %3042 = vmatpush3.bf16.msra.mxu1 %v3410_v10  ;;  %3067 = vmatprep.subr.bf16.mxu0 %v3421_v22  ;;  %v3436_v10 = vld [vmem:[#allocation2 + $0xe8] sm:$0xff]  }
  0x5d   :  { %3043 = vmatprep.subr.bf16.mxu1 %v3411_v12 }
  0x5f   :  { %3068 = vmatpush3.bf16.msra.mxu0 %v3421_v22 }
  0x60   :  { %3044 = vmatpush3.bf16.msra.mxu1 %v3411_v12  ;;  %3069 = vmatprep.subr.bf16.mxu0 %v3422_v23  ;;  %v3438_v12 = vld [vmem:[#allocation2 + $0xd8] sm:$0xff]  }
  0x61   :  { %3045 = vmatprep.subr.bf16.mxu1 %v3412_v13 }
  0x63   :  { %3070 = vmatpush3.bf16.msra.mxu0 %v3422_v23 }
  0x64   :  { %3046 = vmatpush3.bf16.msra.mxu1 %v3412_v13  ;;  %3071 = vmatprep.subr.bf16.mxu0 %v3423_v43  ;;  %v3897_v13 = vsub.s32 2, %v3879_v25 }
  0x65   :  { %3047 = vmatprep.subr.bf16.mxu1 %v3413_v14 }
  0x67   :  { %3072 = vmatpush3.bf16.msra.mxu0 %v3423_v43 }
  0x68   :  { %3048 = vmatpush3.bf16.msra.mxu1 %v3413_v14  ;;  %3073 = vmatprep.subr.bf16.mxu0 %v3424_v44 }
  0x69   :  { %3049 = vmatprep.subr.bf16.mxu1 %v3414_v15 }
  0x6b   :  { %3074 = vmatpush3.bf16.msra.mxu0 %v3424_v44 }
  0x6c   :  { %3050 = vmatpush3.bf16.msra.mxu1 %v3414_v15  ;;  %3075 = vmatprep.subr.bf16.mxu0 %v3425_v45  ;;  %v371_v15 = vrot.slane %v3887_v27, %v3897_v13 }
  0x6d   :  { %3051 = vmatprep.subr.bf16.mxu1 %v3415_v16 }
  0x6f   :  { %3076 = vmatpush3.bf16.msra.mxu0 %v3425_v45 }
  0x70   :  { %3052 = vmatpush3.bf16.msra.mxu1 %v3415_v16  ;;  %3101 = vmatprep.subr.bf16.mxu0 %v3434_v7 }
  0x71   :  { %3053 = vmatprep.subr.bf16.mxu1 %v3416_v17 }
  0x74   :  { %3054 = vmatpush3.bf16.msra.mxu1 %v3416_v17 }
  0x75   :  { %3055 = vmatprep.subr.bf16.mxu1 %v3417_v18 }
  0x78   :  { %3056 = vmatpush3.bf16.msra.mxu1 %v3417_v18 }
  0x79   :  { %3081 = vmatprep.subr.bf16.mxu1 %v3426_v46 }
 0x11b   :  { %v3039_v28 = vpop.f32.mrf.mxu1 }
 0x11c   :  { %v216_v34 = vadd.f32 %v3039_v28, %v158_v29 }
 0x11d   :  { %v207_v30 = vpop.f32.mrf.mxu1 }
 0x11e   :  { %v208_v32 = vadd.f32 %v207_v30, %v158_v29  ;;  %v224_v40 = vmax.f32 %v216_v34, 0.0  ;;  %v3440_v34 = vld [vmem:[#allocation2 + $0xc8] sm:$0xff]  }
 0x11f   :  { %v3040_v31 = vpop.f32.mrf.mxu1 }
 0x120   :  { %v219_v33 = vadd.f32 %v3040_v31, %v158_v29  ;;  %v222_v38 = vmax.f32 %v208_v32, 0.0 }
 0x121   :  { %v210_v35 = vpop.f32.mrf.mxu1 }
 0x122   :  { %v211_v36 = vadd.f32 %v210_v35, %v158_v29  ;;  %v225_v37 = vmax.f32 %v219_v33, 0.0  ;;  %v3439_v33 = vld [vmem:[#allocation2 + $0xd0] sm:$0xff]   ;;  %v3441_v35 = vld [vmem:[#allocation2 + $0xc0] sm:$0xff]  }
 0x124   :  { %v223_v39 = vmax.f32 %v211_v36, 0.0  ;;  %v243_v42 = vpack.c.bf16 %v225_v37, %v224_v40  ;;  %v3442_v36 = vld [vmem:[#allocation2 + $0x138] sm:$0xff]   ;;  %v3443_v37 = vld [vmem:[#allocation2 + $0x130] sm:$0xff]  }
 0x125   :  { %v3446_v40 = vld [vmem:[#allocation2 + $0x118] sm:$0xff]  }
 0x126   :  { %v242_v41 = vpack.c.bf16 %v223_v39, %v222_v38  ;;  %v3444_v38 = vld [vmem:[#allocation2 + $0x128] sm:$0xff]   ;;  %v3445_v39 = vld [vmem:[#allocation2 + $0x120] sm:$0xff]  }
 0x128   :  { %3057 = vmatprep.mubr.bf16.mxu1 %v242_v41  ;;  %v3902_v41 = vsub.s32 3, %v3879_v25 }
 0x129   :  { %3058 = vmatmul.mubr.bf16.vlgmr.msra.gmra.mxu1 %v243_v42 }
 0x12a   :  { %3082 = vmatpush3.bf16.msra.mxu1 %v3426_v46  ;;  %v495_v43 = vrot.slane %v3887_v27, %v3902_v41 }
 0x12b   :  { %3083 = vmatprep.subr.bf16.mxu1 %v3427_v47 }
 0x12e   :  { %3084 = vmatpush3.bf16.msra.mxu1 %v3427_v47 }
 0x12f   :  { %3085 = vmatprep.subr.bf16.mxu1 %v3428_v48 }
 0x132   :  { %3086 = vmatpush3.bf16.msra.mxu1 %v3428_v48 }
 0x133   :  { %3087 = vmatprep.subr.bf16.mxu1 %v3429_v49 }
 0x136   :  { %3088 = vmatpush3.bf16.msra.mxu1 %v3429_v49 }
 0x137   :  { %3089 = vmatprep.subr.bf16.mxu1 %v3430_v50 }
 0x13a   :  { %3090 = vmatpush3.bf16.msra.mxu1 %v3430_v50 }
 0x13b   :  { %3091 = vmatprep.subr.bf16.mxu1 %v3431_v4 }
 0x13e   :  { %3092 = vmatpush3.bf16.msra.mxu1 %v3431_v4 }
 0x13f   :  { %3093 = vmatprep.subr.bf16.mxu1 %v3432_v5 }
 0x142   :  { %3094 = vmatpush3.bf16.msra.mxu1 %v3432_v5 }
 0x143   :  { %3095 = vmatprep.subr.bf16.mxu1 %v3433_v6 }
 0x146   :  { %3096 = vmatpush3.bf16.msra.mxu1 %v3433_v6 }
 0x147   :  { %3121 = vmatprep.subr.bf16.mxu1 %v3442_v36 }
 0x1e9   :  { %v3059_v52 = vpop.f32.mrf.mxu1 }
 0x1ea   :  { %v339_v58 = vadd.f32 %v3059_v52, %v247_v53 }
 0x1eb   :  { %v330_v54 = vpop.f32.mrf.mxu1 }
 0x1ec   :  { %v331_v56 = vadd.f32 %v330_v54, %v247_v53  ;;  %v347_v0 = vmax.f32 %v339_v58, 0.0  ;;  %v3447_v58 = vld [vmem:[#allocation2 + $0x110] sm:$0xff]  }
 0x1ed   :  { %v3060_v55 = vpop.f32.mrf.mxu1 }
 0x1ee   :  { %v342_v57 = vadd.f32 %v3060_v55, %v247_v53  ;;  %v345_v62 = vmax.f32 %v331_v56, 0.0 }
 0x1ef   :  { %v333_v59 = vpop.f32.mrf.mxu1 }
 0x1f0   :  { %v334_v60 = vadd.f32 %v333_v59, %v247_v53  ;;  %v348_v61 = vmax.f32 %v342_v57, 0.0  ;;  %v3448_v59 = vld [vmem:[#allocation2 + $0x108] sm:$0xff]  }
 0x1f2   :  { %v346_v63 = vmax.f32 %v334_v60, 0.0  ;;  %v367_v3 = vpack.c.bf16 %v348_v61, %v347_v0  ;;  %v3449_v60 = vld [vmem:[#allocation2 + $0x100] sm:$0xff]   ;;  %v618_v61 = vsub.s32 4, %v3879_v25 }
 0x1f4   :  { %v366_v1 = vpack.c.bf16 %v346_v63, %v345_v62  ;;  %v619_v63 = vrot.slane %v3887_v27, %v618_v61 }
 0x1f6   :  { %3077 = vmatprep.mubr.bf16.mxu0 %v366_v1 }
 0x1f7   :  { %3078 = vmatmul.mubr.bf16.vlgmr.msra.gmra.mxu0 %v367_v3 }
 0x1f8   :  { %3102 = vmatpush3.bf16.msra.mxu0 %v3434_v7 }
 0x1f9   :  { %3103 = vmatprep.subr.bf16.mxu0 %v3435_v8 }
 0x1fc   :  { %3104 = vmatpush3.bf16.msra.mxu0 %v3435_v8 }
 0x1fd   :  { %3105 = vmatprep.subr.bf16.mxu0 %v3436_v10 }
 0x200   :  { %3106 = vmatpush3.bf16.msra.mxu0 %v3436_v10 }
 0x201   :  { %3107 = vmatprep.subr.bf16.mxu0 %v3437_v11 }
 0x204   :  { %3108 = vmatpush3.bf16.msra.mxu0 %v3437_v11 }
 0x205   :  { %3109 = vmatprep.subr.bf16.mxu0 %v3438_v12 }
 0x208   :  { %3110 = vmatpush3.bf16.msra.mxu0 %v3438_v12 }
 0x209   :  { %3111 = vmatprep.subr.bf16.mxu0 %v3439_v33 }
 0x20c   :  { %3112 = vmatpush3.bf16.msra.mxu0 %v3439_v33 }
 0x20d   :  { %3113 = vmatprep.subr.bf16.mxu0 %v3440_v34 }
 0x210   :  { %3114 = vmatpush3.bf16.msra.mxu0 %v3440_v34 }
 0x211   :  { %3115 = vmatprep.subr.bf16.mxu0 %v3441_v35 }
 0x214   :  { %3116 = vmatpush3.bf16.msra.mxu0 %v3441_v35 }
 0x2b7   :  { %v3079_v14 = vpop.f32.mrf.mxu0 }
 0x2b8   :  { %v463_v20 = vadd.f32 %v3079_v14, %v371_v15 }
 0x2b9   :  { %v454_v16 = vpop.f32.mrf.mxu0 }
 0x2ba   :  { %v455_v18 = vadd.f32 %v454_v16, %v371_v15  ;;  %v471_v30 = vmax.f32 %v463_v20, 0.0  ;;  %v3709_v16 = vmov 0.0   ;;  %v3453_v20 = vld [vmem:[%s4271_s5 + $0x20] sm:$0xff]  }
 0x2bb   :  { %v3080_v17 = vpop.f32.mrf.mxu0  ;;  %3152 = vmatprep.subr.bf16.mxu0 %v3709_v16 }
 0x2bc   :  { %v466_v19 = vadd.f32 %v3080_v17, %v371_v15  ;;  %v469_v28 = vmax.f32 %v455_v18, 0.0  ;;  %v3450_v17 = vld [vmem:[%s4271_s5 + $0x38] sm:$0xff]   ;;  %v3451_v18 = vld [vmem:[%s4271_s5 + $0x30] sm:$0xff]  }
 0x2bd   :  { %v457_v21 = vpop.f32.mrf.mxu0 }
 0x2be   :  { %v458_v22 = vadd.f32 %v457_v21, %v371_v15  ;;  %v472_v23 = vmax.f32 %v466_v19, 0.0  ;;  %v3452_v19 = vld [vmem:[%s4271_s5 + $0x28] sm:$0xff]   ;;  %v3454_v21 = vld [vmem:[%s4271_s5 + $0x18] sm:$0xff]  }
 0x2c0   :  { %v470_v29 = vmax.f32 %v458_v22, 0.0  ;;  %v491_v32 = vpack.c.bf16 %v472_v23, %v471_v30  ;;  %v3455_v22 = vld [vmem:[%s4271_s5 + $0x10] sm:$0xff]   ;;  %v3456_v23 = vld [vmem:[%s4271_s5 + $0x8] sm:$0xff]  }
 0x2c2   :  { %v490_v31 = vpack.c.bf16 %v470_v29, %v469_v28  ;;  %v3945_v28 = vand.u32 127, %v155_v24  ;;  %v742_v29 = vsub.s32 5, %v3879_v25 }
 0x2c4   :  { %3097 = vmatprep.mubr.bf16.mxu1 %v490_v31  ;;  %vm850_vm5 = vcmp.ge.s32.totalorder %v3945_v28, 16  ;;  %vm852_vm7 = vcmp.lt.s32.totalorder %v3945_v28, 24  ;;  %vm862_vm9 = vcmp.ge.s32.totalorder %v3945_v28, 24  ;;  %v743_v31 = vrot.slane %v3887_v27, %v742_v29 }
 0x2c5   :  { %3098 = vmatmul.mubr.bf16.vlgmr.msra.gmra.mxu1 %v491_v32  ;;  %vm851_vm6 = vmand %vm849_vm4, %vm850_vm5  ;;  %vm858_vm12 = vcmp.lt.s32.totalorder %v3945_v28, 8  ;;  %vm864_vm14 = vcmp.lt.s32.totalorder %v3945_v28, 32  ;;  %vm868_vm4 = vcmp.ge.s32.totalorder %v3945_v28, 8 }
 0x2c6   :  { %3122 = vmatpush3.bf16.msra.mxu1 %v3442_v36  ;;  %vm853_vm10 = vmand %vm851_vm6, %vm852_vm7  ;;  %vm870_vm7 = vcmp.lt.s32.totalorder %v3945_v28, 16 }
 0x2c7   :  { %3123 = vmatprep.subr.bf16.mxu1 %v3443_v37  ;;  %vm863_vm13 = vmand %vm861_vm8, %vm862_vm9  ;;  %v854_v33 = vsel %vm853_vm10, 0.125, %v3709_v16  ;;  %vm873_vm9 = vcmask 261120  }
 0x2c8   :  { %vm3962_vm15 = vmand %vm855_vm11, %vm858_vm12 }
 0x2c9   :  { %vm865_vm5 = vmand %vm863_vm13, %vm864_vm14 }
 0x2ca   :  { %3124 = vmatpush3.bf16.msra.mxu1 %v3443_v37  ;;  %vm869_vm6 = vmand %vm867_vm1, %vm868_vm4 }
 0x2cb   :  { %3125 = vmatprep.subr.bf16.mxu1 %v3444_v38  ;;  %vm871_vm8 = vmand %vm869_vm6, %vm870_vm7 }
 0x2cc   :  { %vm2057_vm10 = vmand %vm868_vm4, %vm870_vm7 }
 0x2ce   :  { %3126 = vmatpush3.bf16.msra.mxu1 %v3444_v38 }
 0x2cf   :  { %3127 = vmatprep.subr.bf16.mxu1 %v3445_v39 }
 0x2d2   :  { %3128 = vmatpush3.bf16.msra.mxu1 %v3445_v39 }
 0x2d3   :  { %3129 = vmatprep.subr.bf16.mxu1 %v3446_v40 }
 0x2d6   :  { %3130 = vmatpush3.bf16.msra.mxu1 %v3446_v40  ;;  %v860_v40 = vsel %vm3962_vm15, 0.125, %v854_v33 }
 0x2d7   :  { %3131 = vmatprep.subr.bf16.mxu1 %v3447_v58 }
 0x2da   :  { %3132 = vmatpush3.bf16.msra.mxu1 %v3447_v58  ;;  %v3473_v58 = vld [vmem:[%s4272_s6 + $0x34] ss:$8 sps:$4 sm:$0xff]  }
 0x2db   :  { %3133 = vmatprep.subr.bf16.mxu1 %v3448_v59 }
 0x2de   :  { %3134 = vmatpush3.bf16.msra.mxu1 %v3448_v59  ;;  %v3471_v59 = vld [vmem:[%s4272_s6 + $0x30] ss:$8 sps:$4 sm:$0xff]  }
 0x2df   :  { %3135 = vmatprep.subr.bf16.mxu1 %v3449_v60 }
 0x2e2   :  { %3136 = vmatpush3.bf16.msra.mxu1 %v3449_v60  ;;  %v3477_v60 = vld [vmem:[%s4272_s6 + $0x24] ss:$8 sps:$4 sm:$0xff]  }
 0x2e3   :  { %3141 = vmatprep.subr.mxu1 %v3709_v16 }
 0x385   :  { %v3099_v42 = vpop.f32.mrf.mxu1 }
 0x386   :  { %v587_v48 = vadd.f32 %v3099_v42, %v495_v43 }
 0x387   :  { %v578_v44 = vpop.f32.mrf.mxu1 }
 0x388   :  { %v579_v46 = vadd.f32 %v578_v44, %v495_v43  ;;  %v595_v55 = vmax.f32 %v587_v48, 0.0  ;;  %v866_v44 = vsel %vm865_vm5, 0.125, %v860_v40  ;;  %v3457_v48 = vld [vmem:[%s4271_s5] sm:$0xff]  }
 0x389   :  { %v3100_v45 = vpop.f32.mrf.mxu1 }
 0x38a   :  { %v590_v47 = vadd.f32 %v3100_v45, %v495_v43  ;;  %v593_v53 = vmax.f32 %v579_v46, 0.0 }
 0x38b   :  { %v581_v49 = vpop.f32.mrf.mxu1 }
 0x38c   :  { %v582_v50 = vadd.f32 %v581_v49, %v495_v43  ;;  %v596_v52 = vmax.f32 %v590_v47, 0.0  ;;  %v872_v47 = vsel %vm871_vm8, 0.125, %v866_v44  ;;  %v3458_v49 = vld [vmem:[%s4272_s6 + $0x70] ss:$8 sps:$4 sm:$0xff]  }
 0x38e   :  { %v594_v54 = vmax.f32 %v582_v50, 0.0  ;;  %v615_v57 = vpack.c.bf16 %v596_v52, %v595_v55  ;;  %v3460_v50 = vld [vmem:[%s4272_s6 + $0x74] ss:$8 sps:$4 sm:$0xff]   ;;  %v3463_v52 = vld [vmem:[%s4272_s6 + $0x64] ss:$8 sps:$4 sm:$0xff]  }
 0x38f   :  { %v3464_v55 = vld [vmem:[%s4272_s6 + $0x50] ss:$8 sps:$4 sm:$0xff]  }
 0x390   :  { %v614_v56 = vpack.c.bf16 %v594_v54, %v593_v53  ;;  %v3461_v53 = vld [vmem:[%s4272_s6 + $0x60] ss:$8 sps:$4 sm:$0xff]   ;;  %v3466_v54 = vld [vmem:[%s4272_s6 + $0x54] ss:$8 sps:$4 sm:$0xff]  }
 0x392   :  { %3117 = vmatprep.mubr.bf16.mxu0 %v614_v56  ;;  %v3469_v56 = vld [vmem:[%s4272_s6 + $0x44] ss:$8 sps:$4 sm:$0xff]  }
 0x393   :  { %3118 = vmatmul.mubr.bf16.vlgmr.msra.gmra.mxu0 %v615_v57  ;;  %v3467_v57 = vld [vmem:[%s4272_s6 + $0x40] ss:$8 sps:$4 sm:$0xff]  }
 0x394   :  { %3168 = vmatprep.mubr.msk.bf16.mxu0 %vm3710_vm3, %v3709_v16  ;;  %3153 = vmatpush3.bf16.msra.mxu0 %v3450_v17  ;;  %v3488_v17 = vld [vmem:[#allocation4 + $0x8] sm:$0xff]  }
 0x395   :  { %3154 = vmatprep.subr.bf16.mxu0 %v3709_v16 }
 0x398   :  { %3155 = vmatpush3.bf16.msra.mxu0 %v3451_v18  ;;  %v3489_v18 = vld [vmem:[#allocation4] sm:$0xff]  }
 0x399   :  { %3156 = vmatprep.subr.bf16.mxu0 %v3709_v16 }
 0x39c   :  { %3157 = vmatpush3.bf16.msra.mxu0 %v3452_v19  ;;  %v966_v19 = vsub.s32 6, %v3879_v25 }
 0x39d   :  { %3158 = vmatprep.subr.bf16.mxu0 %v3709_v16 }
 0x3a0   :  { %3159 = vmatpush3.bf16.msra.mxu0 %v3453_v20  ;;  %v967_v20 = vrot.slane %v3887_v27, %v966_v19  ;;  %v3491_v27 = vld [vmem:[#allocation4 + $0x70] sm:$0xff]   ;;  %v1215_v19 = vld [vmem:[%s4299_s17] sm:$0x3] }
 0x3a1   :  { %3160 = vmatprep.subr.bf16.mxu0 %v3709_v16 }
 0x3a4   :  { %3161 = vmatpush3.bf16.msra.mxu0 %v3454_v21 }
 0x3a5   :  { %3162 = vmatprep.subr.bf16.mxu0 %v3709_v16 }
 0x3a8   :  { %3163 = vmatpush3.bf16.msra.mxu0 %v3455_v22 }
 0x3a9   :  { %3164 = vmatprep.subr.bf16.mxu0 %v3709_v16 }
 0x3ac   :  { %3165 = vmatpush3.bf16.msra.mxu0 %v3456_v23 }
 0x3ad   :  { %3166 = vmatprep.subr.bf16.mxu0 %v3709_v16 }
 0x3b0   :  { %3167 = vmatpush3.bf16.msra.mxu0 %v3457_v48  ;;  %v3494_v48 = vld [vmem:[#allocation4 + $0x58] sm:$0xff]  }
 0x3b1   :  { %3172 = vmatprep.subr.bf16.mxu0 %v3709_v16 }
 0x453   :  { %v3119_v62 = vpop.f32.mrf.mxu0 }
 0x454   :  { %v711_v5 = vadd.f32 %v3119_v62, %v619_v63  ;;  %v3475_v62 = vld [vmem:[%s4272_s6 + $0x20] ss:$8 sps:$4 sm:$0xff]  }
 0x455   :  { %v702_v0 = vpop.f32.mrf.mxu0 }
 0x456   :  { %v703_v3 = vadd.f32 %v702_v0, %v619_v63  ;;  %v719_v12 = vmax.f32 %v711_v5, 0.0  ;;  %v3479_v0 = vld [vmem:[%s4272_s6 + $0x10] ss:$8 sps:$4 sm:$0xff]  }
 0x457   :  { %v3120_v1 = vpop.f32.mrf.mxu0 }
 0x458   :  { %v714_v4 = vadd.f32 %v3120_v1, %v619_v63  ;;  %v717_v10 = vmax.f32 %v703_v3, 0.0  ;;  %v1219_v1 = vld [vmem:[%s4275_s9] sm:$0x3] }
 0x459   :  { %v705_v6 = vpop.f32.mrf.mxu0  ;;  %v1225_v3 = vand.u32 %v1219_v1, %v3855_v2  ;;  %v3478_v2 = vld [vmem:[#allocation4 + $0x28] sm:$0xff]  }
 0x45a   :  { %v706_v7 = vadd.f32 %v705_v6, %v619_v63  ;;  %v720_v8 = vmax.f32 %v714_v4, 0.0  ;;  %v3481_v63 = vld [vmem:[%s4272_s6 + $0x14] ss:$8 sps:$4 sm:$0xff]  }
 0x45c   :  { %v718_v11 = vmax.f32 %v706_v7, 0.0  ;;  %v739_v15 = vpack.c.bf16 %v720_v8, %v719_v12  ;;  %v3470_v7 = vld [vmem:[#allocation4 + $0x38] sm:$0xff]   ;;  %v3474_v8 = vld [vmem:[#allocation4 + $0x30] sm:$0xff]  }
 0x45d   :  { %v3486_v12 = vld [vmem:[#allocation4 + $0x18] sm:$0xff]  }
 0x45e   :  { %v738_v14 = vpack.c.bf16 %v718_v11, %v717_v10  ;;  %v3482_v10 = vld [vmem:[#allocation4 + $0x20] sm:$0xff]  }
 0x45f   :  { %v3483_v11 = vld [vmem:[%s4272_s6] ss:$8 sps:$4 sm:$0xff]  }
 0x460   :  { %3137 = vmatprep.mubr.bf16.mxu1 %v738_v14  ;;  %v3711_v14 = vmov 0  }
 0x461   :  { %3138 = vmatmul.mubr.bf16.vlgmr.msra.gmra.mxu1 %v739_v15  ;;  %v3487_v15 = vld [vmem:[#allocation4 + $0x10] sm:$0xff]  }
 0x462   :  { %3149 = vmatprep.mubr.msk.f32.mxu1 %vm3710_vm3, %v3709_v16 }
 0x521   :  { %v3139_v30 = vpop.f32.mrf.mxu1 }
 0x522   :  { %v835_v35 = vadd.f32 %v3139_v30, %v743_v31 }
 0x523   :  { %v826_v24 = vpop.f32.mrf.mxu1 }
 0x524   :  { %v843_v42 = vmax.f32 %v835_v35, 0.0  ;;  %v827_v43 = vadd.f32 %v826_v24, %v743_v31  ;;  %v4056_v24 = vld [vmem:[%s4277_s11] sm:$0x3f] }
 0x525   :  { %v3140_v32 = vpop.f32.mrf.mxu1  ;;  %v1223_v35 = vrot.slane %v4056_v24, %v3882_v26 }
 0x526   :  { %v838_v36 = vadd.f32 %v3140_v32, %v743_v31  ;;  %v841_v46 = vmax.f32 %v827_v43, 0.0  ;;  %v3490_v32 = vld [vmem:[#allocation4 + $0x78] sm:$0xff]  }
 0x527   :  { %v829_v37 = vpop.f32.mrf.mxu1 }
 0x528   :  { %v844_v38 = vmax.f32 %v838_v36, 0.0  ;;  %v830_v39 = vadd.f32 %v829_v37, %v743_v31 }
 0x52a   :  { %3142 = vmatpush3.msra.mxu1 %v844_v38  ;;  %v842_v45 = vmax.f32 %v830_v39, 0.0 }
 0x52b   :  { %3143 = vmatprep.subr.mxu1 %v3709_v16 }
 0x52c   :  { %3144 = vmatpush3.msra.mxu1 %v843_v42 }
 0x52d   :  { %3145 = vmatprep.subr.mxu1 %v3709_v16 }
 0x52e   :  { %3146 = vmatpush3.msra.mxu1 %v842_v45 }
 0x52f   :  { %3147 = vmatprep.subr.mxu1 %v3709_v16 }
 0x530   :  { %3148 = vmatpush3.msra.mxu1 %v841_v46  ;;  %v3492_v46 = vld [vmem:[#allocation4 + $0x68] sm:$0xff]  }
 0x531   :  { %3150 = vmatmul.mubr.msk.f32.vlgmr.msra.gmra.mxu1 %vm873_vm9, %v872_v47  ;;  %1166 = vmatprep.subr.bf16.mxu1 %v3460_v50  ;;  %v3493_v47 = vld [vmem:[#allocation4 + $0x60] sm:$0xff]   ;;  %v3496_v50 = vld [vmem:[#allocation4 + $0x48] sm:$0xff]  }
 0x532   :  { %1167 = vmatpush1.bf16.msra.mxu1 %v3458_v49  ;;  %1198 = vmatprep.mubr.bf16.mxu1 %v3711_v14  ;;  %v3495_v49 = vld [vmem:[#allocation4 + $0x50] sm:$0xff]  }
 0x533   :  { %1168 = vmatprep.subr.bf16.mxu1 %v3463_v52  ;;  %v3497_v52 = vld [vmem:[#allocation4 + $0x40] sm:$0xff]  }
 0x536   :  { %1169 = vmatpush1.bf16.msra.mxu1 %v3461_v53  ;;  %v3498_v53 = vld [vmem:[#allocation4 + $0xb8] sm:$0xff]  }
 0x537   :  { %1170 = vmatprep.subr.bf16.mxu1 %v3466_v54  ;;  %v3499_v54 = vld [vmem:[#allocation4 + $0xb0] sm:$0xff]  }
 0x53a   :  { %1171 = vmatpush1.bf16.msra.mxu1 %v3464_v55  ;;  %v3500_v55 = vld [vmem:[#allocation4 + $0xa8] sm:$0xff]  }
 0x53b   :  { %1172 = vmatprep.subr.bf16.mxu1 %v3469_v56  ;;  %v3501_v56 = vld [vmem:[#allocation4 + $0xa0] sm:$0xff]  }
 0x53e   :  { %1173 = vmatpush1.bf16.msra.mxu1 %v3467_v57  ;;  %v3502_v57 = vld [vmem:[#allocation4 + $0x98] sm:$0xff]  }
 0x53f   :  { %1174 = vmatprep.subr.bf16.mxu1 %v3473_v58  ;;  %v1074_v58 = vld [vmem:[%s4274_s8] sm:$0x3] }
 0x542   :  { %1175 = vmatpush1.bf16.msra.mxu1 %v3471_v59  ;;  %v1079_v59 = vrot.slane %v1074_v58, %v3882_v26 }
 0x543   :  { %1176 = vmatprep.subr.bf16.mxu1 %v3477_v60  ;;  %v1083_v60 = vrot.slane %v1074_v58, %v3892_v51 }
 0x546   :  { %1177 = vmatpush1.bf16.msra.mxu1 %v3475_v62 }
 0x547   :  { %1178 = vmatprep.subr.bf16.mxu1 %v3481_v63 }
 0x54a   :  { %1179 = vmatpush1.bf16.msra.mxu1 %v3479_v0 }
 0x5f1   :  { %v943_v4 = vpop.f32.mrf.mxu1 }
 0x5f2   :  { %v963_v5 = vpack.c.bf16 %v943_v4, %v943_v4 }
 0x5f3   :  { %v3151_v6 = vpop.f32.mrf.mxu1 }
 0x5f4   :  { %3169 = vmatmul.mubr.bf16.vlgmr.msra.gmra.mxu0 %v963_v5 }
 0x5f5   :  { %3173 = vmatpush3.bf16.msra.mxu0 %v1225_v3  ;;  %3174 = vmatprep.mubr.msk.bf16.mxu0 %vm3710_vm3, %v3709_v16 }
 0x5f6   :  { %3178 = vmatprep.subr.bf16.mxu0 %v3709_v16 }
 0x5fc   :  { %3175 = vmatmul.mubr.msk.bf16.vlgmr.msra.gmra.mxu0 %vm159_vm2, %v3873_v9  ;;  %v3485_v9 = vld [vmem:[%s4272_s6 + $0x4] ss:$8 sps:$4 sm:$0xff]   ;;  %vm1882_vm2 = vcmask 15360  }
 0x5fd   :  { %3179 = vmatpush3.bf16.msra.mxu0 %v3470_v7  ;;  %3194 = vmatprep.mubr.msk.bf16.mxu0 %vm3710_vm3, %v3709_v16 }
 0x5fe   :  { %3180 = vmatprep.subr.bf16.mxu0 %v3709_v16  ;;  %1180 = vmatprep.subr.bf16.mxu1 %v3485_v9 }
 0x5ff   :  { %1181 = vmatpush1.bf16.msra.mxu1 %v3483_v11 }
 0x600   :  { %3198 = vmatprep.subr.bf16.mxu1 %v3709_v16 }
 0x601   :  { %3181 = vmatpush3.bf16.msra.mxu0 %v3474_v8  ;;  %v1290_v8 = vrot.slane %v4056_v24, %v3892_v51 }
 0x602   :  { %3182 = vmatprep.subr.bf16.mxu0 %v3709_v16 }
 0x605   :  { %3183 = vmatpush3.bf16.msra.mxu0 %v3478_v2 }
 0x606   :  { %3184 = vmatprep.subr.bf16.mxu0 %v3709_v16 }
 0x609   :  { %3185 = vmatpush3.bf16.msra.mxu0 %v3482_v10 }
 0x60a   :  { %3186 = vmatprep.subr.bf16.mxu0 %v3709_v16 }
 0x60d   :  { %3187 = vmatpush3.bf16.msra.mxu0 %v3486_v12 }
 0x60e   :  { %3188 = vmatprep.subr.bf16.mxu0 %v3709_v16 }
 0x611   :  { %3189 = vmatpush3.bf16.msra.mxu0 %v3487_v15 }
 0x612   :  { %3190 = vmatprep.subr.bf16.mxu0 %v3709_v16 }
 0x615   :  { %3191 = vmatpush3.bf16.msra.mxu0 %v3488_v17 }
 0x616   :  { %3192 = vmatprep.subr.bf16.mxu0 %v3709_v16 }
 0x619   :  { %3193 = vmatpush3.bf16.msra.mxu0 %v3489_v18 }
 0x61a   :  { %3218 = vmatprep.subr.bf16.mxu0 %v3709_v16 }
 0x6b4   :  { %v1050_v21 = vpop.f32.mrf.mxu0 }
 0x6b5   :  { %v1051_v22 = vadd.f32 %v1050_v21, %v967_v20 }
 0x6b6   :  { %v3170_v23 = vpop.f32.mrf.mxu0 }
 0x6b7   :  { %v1056_v30 = vmax.f32 %v1051_v22, 0.0 }
 0x6b8   :  { %v1053_v31 = vpop.f32.mrf.mxu0 }
 0x6b9   :  { %v1073_v33 = vpack.c.bf16 %v1056_v30, %v1056_v30  ;;  %v3503_v30 = vld [vmem:[#allocation4 + $0x90] sm:$0xff]   ;;  %v3504_v31 = vld [vmem:[#allocation4 + $0x88] sm:$0xff]  }
 0x6ba   :  { %v3171_v34 = vpop.f32.mrf.mxu0 }
 0x6bb   :  { %1199 = vmatmul.mubr.bf16.vlgmr.msra.gmra.mxu1 %v1073_v33  ;;  %v3506_v33 = vld [vmem:[#allocation4 + $0xf8] sm:$0xff]   ;;  %v3507_v34 = vld [vmem:[#allocation4 + $0xf0] sm:$0xff]  }
 0x6bc   :  { %v1261_v36 = vpop.f32.mrf.mxu0  ;;  %3199 = vmatpush3.bf16.msra.mxu1 %v3490_v32  ;;  %3214 = vmatprep.mubr.msk.bf16.mxu1 %vm3710_vm3, %v3709_v16  ;;  %v3505_v32 = vld [vmem:[#allocation4 + $0x80] sm:$0xff]  }
 0x6bd   :  { %3200 = vmatprep.subr.bf16.mxu1 %v3709_v16  ;;  %v1262_v38 = vadd.f32 %v1261_v36, %v1223_v35  ;;  %v3509_v36 = vld [vmem:[#allocation4 + $0xe0] sm:$0xff]  }
 0x6be   :  { %v3176_v37 = vpop.f32.mrf.mxu0 }
 0x6bf   :  { %v1268_v43 = vmax.f32 %v1262_v38, 0.0  ;;  %v1403_v37 = vrot.slane %v4056_v24, %v3897_v13 }
 0x6c0   :  { %v1264_v39 = vpop.f32.mrf.mxu0  ;;  %3201 = vmatpush3.bf16.msra.mxu1 %v3491_v27  ;;  %v3510_v27 = vld [vmem:[#allocation4 + $0xd8] sm:$0xff]  }
 0x6c1   :  { %v1265_v40 = vadd.f32 %v1264_v39, %v1223_v35  ;;  %3202 = vmatprep.subr.bf16.mxu1 %v3709_v16  ;;  %v3508_v35 = vld [vmem:[#allocation4 + $0xe8] sm:$0xff]  }
 0x6c2   :  { %v3177_v42 = vpop.f32.mrf.mxu0 }
 0x6c3   :  { %v1269_v44 = vmax.f32 %v1265_v40, 0.0 }
 0x6c4   :  { %3203 = vmatpush3.bf16.msra.mxu1 %v3492_v46 }
 0x6c5   :  { %v1286_v45 = vpack.c.bf16 %v1269_v44, %v1268_v43  ;;  %3204 = vmatprep.subr.bf16.mxu1 %v3709_v16 }
 0x6c7   :  { %3195 = vmatmul.mubr.bf16.vlgmr.msra.gmra.mxu0 %v1286_v45 }
 0x6c8   :  { %3234 = vmatprep.mubr.msk.bf16.mxu0 %vm3710_vm3, %v3709_v16  ;;  %3205 = vmatpush3.bf16.msra.mxu1 %v3493_v47 }
 0x6c9   :  { %3206 = vmatprep.subr.bf16.mxu1 %v3709_v16  ;;  %3219 = vmatpush3.bf16.msra.mxu0 %v3498_v53 }
 0x6ca   :  { %3220 = vmatprep.subr.bf16.mxu0 %v3709_v16 }
 0x6cc   :  { %3207 = vmatpush3.bf16.msra.mxu1 %v3494_v48  ;;  %v3511_v48 = vld [vmem:[#allocation4 + $0xd0] sm:$0xff]  }
 0x6cd   :  { %3208 = vmatprep.subr.bf16.mxu1 %v3709_v16  ;;  %3221 = vmatpush3.bf16.msra.mxu0 %v3499_v54 }
 0x6ce   :  { %3222 = vmatprep.subr.bf16.mxu0 %v3709_v16 }
 0x6d0   :  { %3209 = vmatpush3.bf16.msra.mxu1 %v3495_v49  ;;  %v3512_v49 = vld [vmem:[#allocation4 + $0xc8] sm:$0xff]  }
 0x6d1   :  { %3210 = vmatprep.subr.bf16.mxu1 %v3709_v16  ;;  %3223 = vmatpush3.bf16.msra.mxu0 %v3500_v55  ;;  %v2822_v55 = vld.sshfl [vmem:[%s4278_s12] sm:$0x13 pattern:$0x75316420] }
 0x6d2   :  { %3224 = vmatprep.subr.bf16.mxu0 %v3709_v16 }
 0x6d4   :  { %3211 = vmatpush3.bf16.msra.mxu1 %v3496_v50  ;;  %v3513_v50 = vld [vmem:[#allocation4 + $0xc0] sm:$0xff]  }
 0x6d5   :  { %3212 = vmatprep.subr.bf16.mxu1 %v3709_v16  ;;  %3225 = vmatpush3.bf16.msra.mxu0 %v3501_v56  ;;  %v1866_v56 = vcombine.high %v2822_v55, %v2822_v55 }
 0x6d6   :  { %3226 = vmatprep.subr.bf16.mxu0 %v3709_v16 }
 0x6d8   :  { %3213 = vmatpush3.bf16.msra.mxu1 %v3497_v52  ;;  %v3712_v52 = vmov 1966171168  }
 0x6d9   :  { %3238 = vmatprep.subr.bf16.mxu1 %v3709_v16  ;;  %3227 = vmatpush3.bf16.msra.mxu0 %v3502_v57  ;;  %v1868_v53 = vunpack.c.l.s4 %v3712_v52 }
 0x6da   :  { %3228 = vmatprep.subr.bf16.mxu0 %v3709_v16 }
 0x6db   :  { %v1869_v54 = vunpack.c.0.s8 %v1868_v53 }
 0x6dd   :  { %3229 = vmatpush3.bf16.msra.mxu0 %v3503_v30  ;;  %v1872_v57 = vsub.s32 %v1869_v54, %v3879_v25  ;;  %v3521_v30 = vld [vmem:[#allocation4 + $0x100] sm:$0xff]  }
 0x6de   :  { %3230 = vmatprep.subr.bf16.mxu0 %v3709_v16 }
 0x6df   :  { %v1880_v58 = vrot.slane %v1866_v56, %v1872_v57 }
 0x6e1   :  { %3231 = vmatpush3.bf16.msra.mxu0 %v3504_v31  ;;  %v1629_v31 = vrot.slane %v4056_v24, %v618_v61  ;;  %v4155_v61 = vld [vmem:[%s4279_s13] sm:$0x7] }
 0x6e2   :  { %3232 = vmatprep.subr.bf16.mxu0 %v3709_v16  ;;  %v1846_v54 = vrot.slane %v4155_v61, %v3882_v26 }
 0x6e5   :  { %3233 = vmatpush3.bf16.msra.mxu0 %v3505_v32 }
 0x6e6   :  { %3258 = vmatprep.subr.bf16.mxu0 %v3709_v16 }
 0x77b   :  { %v1200_v62 = vpop.f32.mrf.mxu1 }
 0x77c   :  { %v1201_v0 = vadd.f32 %v1200_v62, %v1079_v59  ;;  %v4112_v59 = vrot.slane %v2822_v55, %v1872_v57  ;;  %v3515_v62 = vld [vmem:[#allocation4 + $0x130] sm:$0xff]   ;;  %v3522_v57 = vld [vmem:[#allocation7 + $0x38] sm:$0xff]  }
 0x77d   :  { %v1202_v63 = vpop.f32.mrf.mxu1 }
 0x77e   :  { %v1203_v1 = vadd.f32 %v1202_v63, %v1083_v60  ;;  %v3514_v60 = vld [vmem:[#allocation4 + $0x138] sm:$0xff]   ;;  %v3516_v63 = vld [vmem:[#allocation4 + $0x128] sm:$0xff]  }
 0x77f   :  { %v1204_v3 = vpop.f32.mrf.mxu1 }
 0x780   :  { %v1209_v4 = vcombine.low %v1201_v0, %v1203_v1  ;;  %v1212_v5 = vmul.f32 0.5, %v1203_v1  ;;  %v3518_v1 = vld [vmem:[#allocation4 + $0x118] sm:$0xff]   ;;  %v1516_v3 = vrot.slane %v4056_v24, %v3902_v41 }
 0x781   :  { %v1205_v6 = vpop.f32.mrf.mxu1 }
 0x782   :  { %1211 = vst [vmem:[%s4285_s19] sm:$0xff] %v1209_v4  ;;  %v1213_v7 = vmul.f32 1.442695, %v1212_v5 }
 0x784   :  { %3562 = vpow2.f32 %v1213_v7 }
 0x787   :  { %v1373_v2 = vpop.f32.mrf.mxu0 }
 0x788   :  { %v1374_v9 = vadd.f32 %v1373_v2, %v1290_v8 }
 0x789   :  { %v3196_v10 = vpop.f32.mrf.mxu0 }
 0x78a   :  { %v1380_v17 = vmax.f32 %v1374_v9, 0.0 }
 0x78b   :  { %v1376_v11 = vpop.f32.mrf.mxu0 }
 0x78c   :  { %v1377_v12 = vadd.f32 %v1376_v11, %v1290_v8 }
 0x78d   :  { %v3197_v15 = vpop.f32.mrf.mxu0 }
 0x78e   :  { %v1381_v18 = vmax.f32 %v1377_v12, 0.0  ;;  %v1890_v12 = vsel %vm166_vm0, %v4112_v59, 0  ;;  %v1834_v15 = vld [vmem:[%s4300_s2] sm:$0xff] }
 0x790   :  { %v1399_v20 = vpack.c.bf16 %v1381_v18, %v1380_v17  ;;  %v1835_v17 = vld [vmem:[%s4300_s2 + $0x8] sm:$0xff] }
 0x791   :  { %v3563_v21 = vpop.eup %3562  ;;  %v1839_v18 = vpack.c.bf16 %v1835_v17, %v1834_v15 }
 0x792   :  { %3215 = vmatmul.mubr.bf16.vlgmr.msra.gmra.mxu1 %v1399_v20  ;;  %v1216_v22 = vmul.f32 %v3563_v21, %v1215_v19  ;;  %v1836_v19 = vld [vmem:[%s4300_s2 + $0x10] sm:$0xff]  ;;  %v1837_v20 = vld [vmem:[%s4300_s2 + $0x18] sm:$0xff] }
 0x793   :  { %3254 = vmatprep.mubr.msk.bf16.mxu1 %vm3710_vm3, %v3709_v16  ;;  %3239 = vmatpush3.bf16.msra.mxu1 %v3506_v33  ;;  %v4139_v21 = vpack.c.bf16 %v1837_v20, %v1836_v19 }
 0x794   :  { %v4092_v23 = vadd.f32 %v1216_v22, %v1201_v0  ;;  %3240 = vmatprep.subr.bf16.mxu1 %v3709_v16  ;;  %v3517_v0 = vld [vmem:[#allocation4 + $0x120] sm:$0xff]   ;;  %v3519_v22 = vld [vmem:[#allocation4 + $0x110] sm:$0xff]  }
 0x797   :  { %3241 = vmatpush3.bf16.msra.mxu1 %v3507_v34 }
 0x798   :  { %3242 = vmatprep.subr.bf16.mxu1 %v3709_v16 }
 0x79b   :  { %3243 = vmatpush3.bf16.msra.mxu1 %v3508_v35 }
 0x79c   :  { %3244 = vmatprep.subr.bf16.mxu1 %v3709_v16 }
 0x79f   :  { %3245 = vmatpush3.bf16.msra.mxu1 %v3509_v36 }
 0x7a0   :  { %3246 = vmatprep.subr.bf16.mxu1 %v3709_v16 }
 0x7a3   :  { %3247 = vmatpush3.bf16.msra.mxu1 %v3510_v27 }
 0x7a4   :  { %3248 = vmatprep.subr.bf16.mxu1 %v3709_v16 }
 0x7a7   :  { %3249 = vmatpush3.bf16.msra.mxu1 %v3511_v48 }
 0x7a8   :  { %3250 = vmatprep.subr.bf16.mxu1 %v3709_v16 }
 0x7ab   :  { %3251 = vmatpush3.bf16.msra.mxu1 %v3512_v49 }
 0x7ac   :  { %3252 = vmatprep.subr.bf16.mxu1 %v3709_v16 }
 0x7af   :  { %3253 = vmatpush3.bf16.msra.mxu1 %v3513_v50 }
 0x7b0   :  { %2823 = vmatprep.subr.msk.bf16.mxu1 %vm166_vm0, %v1880_v58 }
 0x852   :  { %v1486_v38 = vpop.f32.mrf.mxu1 }
 0x853   :  { %v1487_v40 = vadd.f32 %v1486_v38, %v1403_v37 }
 0x854   :  { %v3216_v39 = vpop.f32.mrf.mxu1 }
 0x855   :  { %v1493_v45 = vmax.f32 %v1487_v40, 0.0 }
 0x856   :  { %v1489_v42 = vpop.f32.mrf.mxu1 }
 0x857   :  { %v1490_v43 = vadd.f32 %v1489_v42, %v1403_v37 }
 0x858   :  { %v3217_v44 = vpop.f32.mrf.mxu1 }
 0x859   :  { %v1494_v46 = vmax.f32 %v1490_v43, 0.0 }
 0x85b   :  { %v1512_v47 = vpack.c.bf16 %v1494_v46, %v1493_v45 }
 0x85d   :  { %3235 = vmatmul.mubr.bf16.vlgmr.msra.gmra.mxu0 %v1512_v47  ;;  %v1850_v47 = vrot.slane %v4155_v61, %v3892_v51 }
 0x85e   :  { %3274 = vmatprep.mubr.msk.bf16.mxu0 %vm3710_vm3, %v3709_v16  ;;  %3259 = vmatpush3.bf16.msra.mxu0 %v3514_v60  ;;  %v3523_v60 = vld [vmem:[#allocation7 + $0x30] sm:$0xff]  }
 0x85f   :  { %3260 = vmatprep.subr.bf16.mxu0 %v3709_v16 }
 0x862   :  { %3261 = vmatpush3.bf16.msra.mxu0 %v3515_v62  ;;  %v3524_v62 = vld [vmem:[#allocation7 + $0x28] sm:$0xff]  }
 0x863   :  { %3262 = vmatprep.subr.bf16.mxu0 %v3709_v16 }
 0x866   :  { %3263 = vmatpush3.bf16.msra.mxu0 %v3516_v63  ;;  %v3525_v63 = vld [vmem:[#allocation7 + $0x20] sm:$0xff]  }
 0x867   :  { %3264 = vmatprep.subr.bf16.mxu0 %v3709_v16 }
 0x86a   :  { %3265 = vmatpush3.bf16.msra.mxu0 %v3517_v0  ;;  %v3526_v0 = vld [vmem:[#allocation7 + $0x18] sm:$0xff]  }
 0x86b   :  { %3266 = vmatprep.subr.bf16.mxu0 %v3709_v16 }
 0x86e   :  { %3267 = vmatpush3.bf16.msra.mxu0 %v3518_v1  ;;  %v3527_v1 = vld [vmem:[#allocation7 + $0x10] sm:$0xff]  }
 0x86f   :  { %3268 = vmatprep.subr.bf16.mxu0 %v3709_v16 }
 0x872   :  { %3269 = vmatpush3.bf16.msra.mxu0 %v3519_v22 }
 0x873   :  { %3270 = vmatprep.subr.bf16.mxu0 %v3709_v16 }
 0x91d   :  { %v1599_v4 = vpop.f32.mrf.mxu0 }
 0x91e   :  { %v1600_v6 = vadd.f32 %v1599_v4, %v1516_v3  ;;  %v3529_v4 = vld [vmem:[#allocation7] sm:$0xff]  }
 0x91f   :  { %v3236_v5 = vpop.f32.mrf.mxu0 }
 0x920   :  { %v1606_v10 = vmax.f32 %v1600_v6, 0.0  ;;  %v2148_v5 = vpack.c.bf16 %v4092_v23, %v4092_v23  ;;  %v1881_v6 = vcombine.high %v4112_v59, %v4112_v59  ;;  %v1742_v23 = vrot.slane %v4056_v24, %v742_v29 }
 0x921   :  { %v1602_v7 = vpop.f32.mrf.mxu0 }
 0x922   :  { %v1603_v8 = vadd.f32 %v1602_v7, %v1516_v3  ;;  %v3528_v3 = vld [vmem:[#allocation7 + $0x8] sm:$0xff]   ;;  %v1896_v7 = vsel %vm166_vm0, %v1881_v6, 0 }
 0x923   :  { %v3237_v2 = vpop.f32.mrf.mxu0 }
 0x924   :  { %v1607_v9 = vmax.f32 %v1603_v8, 0.0 }
 0x926   :  { %v1625_v11 = vpack.c.bf16 %v1607_v9, %v1606_v10 }
 0x928   :  { %3255 = vmatmul.mubr.bf16.vlgmr.msra.gmra.mxu1 %v1625_v11 }
 0x929   :  { %1913 = vmatpush1.bf16.msra.mxu1 %v1890_v12  ;;  %1930 = vmatprep.mubr.bf16.mxu1 %v3711_v14 }
 0x92a   :  { %3396 = vmatprep.subr.msk.bf16.mxu1 %vm166_vm0, %v1881_v6  ;;  %vm2062_vm0 = vcmask 130048  }
 0x930   :  { %2824 = vmatmul.mubr.msk.bf16.vlgmr.msra.gmra.mxu1 %vm1882_vm2, %v1839_v18 }
 0x931   :  { %1938 = vmatprep.mubr.bf16.mxu1 %v3711_v14  ;;  %v3520_v14 = vld [vmem:[#allocation4 + $0x108] sm:$0xff]   ;;  %3279 = vmatpush3.bf16.msra.mxu1 %v1896_v7 }
 0x932   :  { %3271 = vmatpush3.bf16.msra.mxu0 %v3520_v14  ;;  %3290 = vmatprep.subr.bf16.mxu1 %v3709_v16 }
 0x933   :  { %3272 = vmatprep.subr.bf16.mxu0 %v3709_v16 }
 0x936   :  { %3273 = vmatpush3.bf16.msra.mxu0 %v3521_v30 }
 0x937   :  { %3284 = vmatprep.subr.bf16.mxu0 %v3709_v16 }
 0x938   :  { %2825 = vmatmul.mubr.msk.bf16.gmra.mxu1 %vm1882_vm2, %v4139_v21 }
 0x939   :  { %3280 = vmatprep.mubr.msk.bf16.mxu1 %vm1882_vm2, %v1839_v18 }
 0x940   :  { %3281 = vmatmul.mubr.msk.bf16.vlgmr.msra.gmra.mxu1 %vm1882_vm2, %v4139_v21 }
 0x941   :  { %3292 = vmatprep.mubr.msk.bf16.mxu1 %vm3710_vm3, %v3709_v16 }
 0x9e8   :  { %v1712_v32 = vpop.f32.mrf.mxu1 }
 0x9e9   :  { %v1713_v34 = vadd.f32 %v1712_v32, %v1629_v31 }
 0x9ea   :  { %v3256_v33 = vpop.f32.mrf.mxu1 }
 0x9eb   :  { %v1719_v37 = vmax.f32 %v1713_v34, 0.0 }
 0x9ec   :  { %v1715_v35 = vpop.f32.mrf.mxu1 }
 0x9ed   :  { %v1716_v36 = vadd.f32 %v1715_v35, %v1629_v31 }
 0x9ee   :  { %v3257_v27 = vpop.f32.mrf.mxu1 }
 0x9ef   :  { %v1720_v38 = vmax.f32 %v1716_v36, 0.0 }
 0x9f0   :  { %v1932_v39 = vpop.f32.mrf.mxu1 }
 0x9f1   :  { %v1738_v40 = vpack.c.bf16 %v1720_v38, %v1719_v37  ;;  %v1933_v56 = vadd.f32 %v1932_v39, %v1846_v54 }
 0x9f2   :  { %v1934_v42 = vpop.f32.mrf.mxu1 }
 0x9f3   :  { %3275 = vmatmul.mubr.bf16.vlgmr.msra.gmra.mxu0 %v1738_v40 }
 0x9f4   :  { %v1935_v43 = vpop.f32.mrf.mxu1  ;;  %3286 = vmatprep.mubr.msk.bf16.mxu0 %vm3710_vm3, %v3709_v16 }
 0x9f5   :  { %v1936_v55 = vadd.f32 %v1935_v43, %v1846_v54  ;;  %v3531_v54 = vld [vmem:[#allocation6 + $0x30] sm:$0xff]  }
 0x9f6   :  { %v1937_v44 = vpop.f32.mrf.mxu1 }
 0x9f7   :  { %v1994_v58 = vpack.c.bf16 %v1936_v55, %v1933_v56  ;;  %v3532_v55 = vld [vmem:[#allocation6 + $0x28] sm:$0xff]   ;;  %v3533_v56 = vld [vmem:[#allocation6 + $0x20] sm:$0xff]  }
 0x9f8   :  { %v1940_v45 = vpop.f32.mrf.mxu1 }
 0x9fa   :  { %v1941_v46 = vpop.f32.mrf.mxu1 }
 0x9fb   :  { %v1942_v50 = vadd.f32 %v1941_v46, %v1850_v47 }
 0x9fc   :  { %v1943_v48 = vpop.f32.mrf.mxu1 }
 0x9fe   :  { %v1944_v49 = vpop.f32.mrf.mxu1 }
 0x9ff   :  { %v1945_v52 = vadd.f32 %v1944_v49, %v1850_v47 }
 0xa00   :  { %v3282_v33 = vpop.f32.mrf.mxu1 }
 0xa01   :  { %v1995_v53 = vpack.c.bf16 %v1945_v52, %v1942_v50  ;;  %v3530_v52 = vld [vmem:[#allocation6 + $0x38] sm:$0xff]  }
 0xa02   :  { %v4201_v43 = vpop.f32.mrf.mxu1 }
 0xa03   :  { %3285 = vmatpush3.bf16.xpose.msra.mxu0 %v1995_v53 }
 0xa04   :  { %3296 = vmatprep.subr.bf16.mxu0 %v3709_v16  ;;  %v3283_v44 = vpop.f32.mrf.mxu1 }
 0xa05   :  { %v3556_v44 = vld [vmem:[#allocation10 + $0x28] sm:$0xff]  }
 0xa0a   :  { %3287 = vmatmul.mubr.bf16.vlgmr.msra.gmra.mxu0 %v1994_v58  ;;  %v3535_v58 = vld [vmem:[#allocation6 + $0x10] sm:$0xff]  }
 0xa0b   :  { %3297 = vmatpush3.bf16.msra.mxu0 %v3522_v57  ;;  %3312 = vmatprep.mubr.msk.bf16.mxu0 %vm3710_vm3, %v3709_v16  ;;  %v3534_v57 = vld [vmem:[#allocation6 + $0x18] sm:$0xff]  }
 0xa0c   :  { %3298 = vmatprep.subr.bf16.mxu0 %v3709_v16 }
 0xa0f   :  { %3299 = vmatpush3.bf16.msra.mxu0 %v3523_v60  ;;  %v3536_v60 = vld [vmem:[#allocation6 + $0x8] sm:$0xff]  }
 0xa10   :  { %3300 = vmatprep.subr.bf16.mxu0 %v3709_v16 }
 0xa13   :  { %3301 = vmatpush3.bf16.msra.mxu0 %v3524_v62  ;;  %v3537_v62 = vld [vmem:[#allocation6] sm:$0xff]  }
 0xa14   :  { %3302 = vmatprep.subr.bf16.mxu0 %v3709_v16 }
 0xa17   :  { %3303 = vmatpush3.bf16.msra.mxu0 %v3525_v63  ;;  %v3538_v63 = vld [vmem:[#allocation9 + $0x38] sm:$0xff]  }
 0xa18   :  { %3304 = vmatprep.subr.bf16.mxu0 %v3709_v16 }
 0xa1b   :  { %3305 = vmatpush3.bf16.msra.mxu0 %v3526_v0  ;;  %v3539_v0 = vld [vmem:[#allocation9 + $0x30] sm:$0xff]  }
 0xa1c   :  { %3306 = vmatprep.subr.bf16.mxu0 %v3709_v16 }
 0xa1f   :  { %3307 = vmatpush3.bf16.msra.mxu0 %v3527_v1  ;;  %v3540_v1 = vld [vmem:[#allocation9 + $0x28] sm:$0xff]  }
 0xa20   :  { %3308 = vmatprep.subr.bf16.mxu0 %v3709_v16 }
 0xa23   :  { %3309 = vmatpush3.bf16.msra.mxu0 %v3528_v3  ;;  %v3541_v3 = vld [vmem:[#allocation9 + $0x20] sm:$0xff]  }
 0xa24   :  { %3310 = vmatprep.subr.bf16.mxu0 %v3709_v16 }
 0xa27   :  { %3311 = vmatpush3.bf16.msra.mxu0 %v3529_v4  ;;  %v1984_v4 = vpop.f32.mrf.mxu1 }
 0xa28   :  { %3336 = vmatprep.subr.bf16.mxu0 %v3709_v16 }
 0xa2a   :  { %3313 = vmatmul.mubr.bf16.vlgmr.msra.gmra.mxu0 %v2148_v5 }
 0xa2b   :  { %3352 = vmatprep.mubr.msk.bf16.mxu0 %vm3710_vm3, %v3709_v16  ;;  %3337 = vmatpush3.bf16.msra.mxu0 %v3538_v63 }
 0xa2c   :  { %3338 = vmatprep.subr.bf16.mxu0 %v3709_v16 }
 0xa2f   :  { %3339 = vmatpush3.bf16.msra.mxu0 %v3539_v0 }
 0xa30   :  { %3340 = vmatprep.subr.bf16.mxu0 %v3709_v16 }
 0xa33   :  { %3341 = vmatpush3.bf16.msra.mxu0 %v3540_v1 }
 0xa34   :  { %3342 = vmatprep.subr.bf16.mxu0 %v3709_v16 }
 0xa37   :  { %3343 = vmatpush3.bf16.msra.mxu0 %v3541_v3 }
 0xa38   :  { %3344 = vmatprep.subr.bf16.mxu0 %v3709_v16 }
 0xab3   :  { %v1825_v8 = vpop.f32.mrf.mxu0 }
 0xab4   :  { %v1826_v59 = vadd.f32 %v1825_v8, %v1742_v23 }
 0xab5   :  { %v3276_v2 = vpop.f32.mrf.mxu0 }
 0xab6   :  { %v1832_v12 = vmax.f32 %v1826_v59, 0.0  ;;  %v3542_v2 = vld [vmem:[#allocation9 + $0x18] sm:$0xff]   ;;  %v3543_v59 = vld [vmem:[#allocation9 + $0x10] sm:$0xff]  }
 0xab7   :  { %v1828_v10 = vpop.f32.mrf.mxu0  ;;  %3345 = vmatpush3.bf16.msra.mxu0 %v3542_v2 }
 0xab8   :  { %v1829_v9 = vadd.f32 %v1828_v10, %v1742_v23  ;;  %3346 = vmatprep.subr.bf16.mxu0 %v3709_v16  ;;  %v3544_v10 = vld [vmem:[#allocation9 + $0x8] sm:$0xff]  }
 0xab9   :  { %v3277_v11 = vpop.f32.mrf.mxu0 }
 0xaba   :  { %v1833_v15 = vmax.f32 %v1829_v9, 0.0  ;;  %v3545_v9 = vld [vmem:[#allocation9] sm:$0xff]   ;;  %v3546_v11 = vld [vmem:[#allocation9 + $0x78] sm:$0xff]  }
 0xabb   :  { %3347 = vmatpush3.bf16.msra.mxu0 %v3543_v59 }
 0xabc   :  { %v2086_v17 = vpack.c.bf16 %v1833_v15, %v1832_v12  ;;  %3348 = vmatprep.subr.bf16.mxu0 %v3709_v16  ;;  %v3547_v12 = vld [vmem:[#allocation9 + $0x70] sm:$0xff]   ;;  %v3548_v15 = vld [vmem:[#allocation9 + $0x68] sm:$0xff]  }
 0xabe   :  { %3291 = vmatpush3.bf16.msra.mxu1 %v2086_v17  ;;  %v3549_v17 = vld [vmem:[#allocation9 + $0x60] sm:$0xff]  }
 0xabf   :  { %3316 = vmatprep.subr.bf16.mxu1 %v3709_v16  ;;  %3349 = vmatpush3.bf16.msra.mxu0 %v3544_v10 }
 0xac0   :  { %3350 = vmatprep.subr.bf16.mxu0 %v3709_v16 }
 0xac3   :  { %3351 = vmatpush3.bf16.msra.mxu0 %v3545_v9 }
 0xac4   :  { %3376 = vmatprep.subr.bf16.mxu0 %v3709_v16 }
 0xaca   :  { %v2030_v18 = vpop.f32.mrf.mxu0 }
 0xacb   :  { %v2060_v19 = vsel %vm858_vm12, %v2030_v18, -1e+30  ;;  %v3550_v18 = vld [vmem:[#allocation9 + $0x58] sm:$0xff]  }
 0xacc   :  { %v3288_v25 = vpop.f32.mrf.mxu0  ;;  %v2063_v29 = vsel %vm2062_vm0, %v2060_v19, -inf }
 0xacd   :  { %2064 = vmax.xlane.f32.xlu0 %v2063_v29  ;;  %v4236_v29 = vld [vmem:[%s4284_s18] sm:$0xf] }
 0xace   :  { %v2033_v24 = vpop.f32.mrf.mxu0 }
 0xacf   :  { %v2061_v20 = vsel %vm2057_vm10, %v2033_v24, -1e+30 }
 0xad0   :  { %v3289_v21 = vpop.f32.mrf.mxu0  ;;  %v2066_v22 = vsel %vm2062_vm0, %v2061_v20, -inf }
 0xad1   :  { %2067 = vmax.xlane.f32.xlu0 %v2066_v22 }
 0xaea   :  { %v4197_v14 = vpop.f32.mrf.mxu0 }
 0xaeb   :  { %v2240_v25 = vrot.slane %v4197_v14, %v3882_v26 }
 0xaec   :  { %v3314_v30 = vpop.f32.mrf.mxu0 }
 0xaed   :  { %v2246_v30 = vrot.slane %v4197_v14, %v3892_v51  ;;  %v3552_v14 = vld [vmem:[#allocation9 + $0x48] sm:$0xff]  }
 0xaee   :  { %v2234_v31 = vpop.f32.mrf.mxu0 }
 0xaf0   :  { %v3315_v32 = vpop.f32.mrf.mxu0 }
 0xb56   :  { %v2065_v34 = vpop.xlane.xlu0 %2064 }
 0xb57   :  { %v2069_v35 = vsub.f32 %v2060_v19, %v2065_v34  ;;  %v1854_v19 = vrot.slane %v4155_v61, %v3897_v13  ;;  %v2360_v61 = vrot.slane %v4236_v29, %v3882_v26  ;;  %v3553_v26 = vld [vmem:[#allocation9 + $0x40] sm:$0xff]  }
 0xb59   :  { %v2071_v36 = vmul.f32 1.442695, %v2069_v35  ;;  %v1985_v33 = vadd.f32 %v1984_v4, %v1854_v19 }
 0xb5a   :  { %v2068_v27 = vpop.xlane.xlu0 %2067 }
 0xb5b   :  { %3564 = vpow2.f32 %v2071_v36  ;;  %v2070_v28 = vsub.f32 %v2061_v20, %v2068_v27  ;;  %v1982_v20 = vadd.f32 %v4201_v43, %v1854_v19  ;;  %v3555_v43 = vld [vmem:[#allocation10 + $0x30] sm:$0xff]  }
 0xb5d   :  { %v2073_v37 = vmul.f32 1.442695, %v2070_v28 }
 0xb5f   :  { %3566 = vpow2.f32 %v2073_v37 }
 0xb68   :  { %v3565_v38 = vpop.eup %3564 }
 0xb69   :  { %v2075_v39 = vsel %vm2062_vm0, %v3565_v38, 0.0 }
 0xb6a   :  { %2076 = vadd.xlane.f32.xlu1 %v2075_v39 }
 0xb6c   :  { %v3567_v40 = vpop.eup %3566 }
 0xb6d   :  { %v2078_v42 = vsel %vm2062_vm0, %v3567_v40, 0.0 }
 0xb6e   :  { %2079 = vadd.xlane.f32.xlu1 %v2078_v42  ;;  %v3554_v42 = vld [vmem:[#allocation10 + $0x38] sm:$0xff]  }
 0xbf3   :  { %v2077_v45 = vpop.xlane.xlu1 %2076 }
 0xbf4   :  { %3568 = vrcp.f32 %v2077_v45  ;;  %v3557_v45 = vld [vmem:[#allocation10 + $0x20] sm:$0xff]  }
 0xbf7   :  { %v2080_v46 = vpop.xlane.xlu1 %2079 }
 0xbf8   :  { %3570 = vrcp.f32 %v2080_v46  ;;  %v3558_v46 = vld [vmem:[#allocation10 + $0x18] sm:$0xff]  }
 0xc01   :  { %v3569_v47 = vpop.eup %3568 }
 0xc02   :  { %v2083_v50 = vmul.f32 %v3569_v47, %v3565_v38  ;;  %v2385_v47 = vrot.slane %v4236_v29, %v3892_v51  ;;  %v2498_v51 = vrot.slane %v4236_v29, %v3897_v13 }
 0xc05   :  { %v3571_v48 = vpop.eup %3570 }
 0xc06   :  { %v2084_v49 = vmul.f32 %v3571_v48, %v3567_v40  ;;  %v3551_v40 = vld [vmem:[#allocation9 + $0x50] sm:$0xff]  }
 0xc08   :  { %v2085_v53 = vpack.c.bf16 %v2084_v49, %v2083_v50 }
 0xc0a   :  { %3293 = vmatmul.mubr.msk.bf16.vlgmr.msra.gmra.mxu1 %vm2062_vm0, %v2085_v53 }
 0xc0b   :  { %3317 = vmatpush3.bf16.msra.mxu1 %v3530_v52  ;;  %3332 = vmatprep.mubr.msk.bf16.mxu1 %vm3710_vm3, %v3709_v16 }
 0xc0c   :  { %3318 = vmatprep.subr.bf16.mxu1 %v3709_v16 }
 0xc0f   :  { %3319 = vmatpush3.bf16.msra.mxu1 %v3531_v54 }
 0xc10   :  { %3320 = vmatprep.subr.bf16.mxu1 %v3709_v16 }
 0xc13   :  { %3321 = vmatpush3.bf16.msra.mxu1 %v3532_v55 }
 0xc14   :  { %3322 = vmatprep.subr.bf16.mxu1 %v3709_v16 }
 0xc17   :  { %3323 = vmatpush3.bf16.msra.mxu1 %v3533_v56 }
 0xc18   :  { %3324 = vmatprep.subr.bf16.mxu1 %v3709_v16 }
 0xc1b   :  { %3325 = vmatpush3.bf16.msra.mxu1 %v3534_v57 }
 0xc1c   :  { %3326 = vmatprep.subr.bf16.mxu1 %v3709_v16 }
 0xc1f   :  { %3327 = vmatpush3.bf16.msra.mxu1 %v3535_v58  ;;  %v3559_v58 = vld [vmem:[#allocation10 + $0x10] sm:$0xff]  }
 0xc20   :  { %3328 = vmatprep.subr.bf16.mxu1 %v3709_v16 }
 0xc23   :  { %3329 = vmatpush3.bf16.msra.mxu1 %v3536_v60  ;;  %v3560_v60 = vld [vmem:[#allocation10 + $0x8] sm:$0xff]  }
 0xc24   :  { %3330 = vmatprep.subr.bf16.mxu1 %v3709_v16 }
 0xc27   :  { %3331 = vmatpush3.bf16.msra.mxu1 %v3537_v62  ;;  %v3561_v62 = vld [vmem:[#allocation10] sm:$0xff]  }
 0xc28   :  { %3356 = vmatprep.subr.bf16.mxu1 %v3709_v16 }
 0xcca   :  { %v2124_v5 = vpop.f32.mrf.mxu1 }
 0xccc   :  { %v3294_v6 = vpop.f32.mrf.mxu1 }
 0xcce   :  { %v2127_v7 = vpop.f32.mrf.mxu1 }
 0xccf   :  { %v2265_v23 = vpack.c.bf16 %v2127_v7, %v2124_v5 }
 0xcd0   :  { %v3295_v8 = vpop.f32.mrf.mxu1 }
 0xcd1   :  { %3333 = vmatmul.mubr.bf16.vlgmr.msra.gmra.mxu1 %v2265_v23  ;;  %v2610_v8 = vrot.slane %v4236_v29, %v3902_v41 }
 0xcd2   :  { %3372 = vmatprep.mubr.msk.bf16.mxu1 %vm3710_vm3, %v3709_v16  ;;  %3357 = vmatpush3.bf16.msra.mxu1 %v3546_v11 }
 0xcd3   :  { %3358 = vmatprep.subr.bf16.mxu1 %v3709_v16 }
 0xcd6   :  { %3359 = vmatpush3.bf16.msra.mxu1 %v3547_v12 }
 0xcd7   :  { %3360 = vmatprep.subr.bf16.mxu1 %v3709_v16 }
 0xcda   :  { %3361 = vmatpush3.bf16.msra.mxu1 %v3548_v15 }
 0xcdb   :  { %3362 = vmatprep.subr.bf16.mxu1 %v3709_v16 }
 0xcde   :  { %3363 = vmatpush3.bf16.msra.mxu1 %v3549_v17 }
 0xcdf   :  { %3364 = vmatprep.subr.bf16.mxu1 %v3709_v16 }
 0xce2   :  { %3365 = vmatpush3.bf16.msra.mxu1 %v3550_v18 }
 0xce3   :  { %3366 = vmatprep.subr.bf16.mxu1 %v3709_v16 }
 0xce6   :  { %3367 = vmatpush3.bf16.msra.mxu1 %v3551_v40 }
 0xce7   :  { %3368 = vmatprep.subr.bf16.mxu1 %v3709_v16 }
 0xcea   :  { %3369 = vmatpush3.bf16.msra.mxu1 %v3552_v14 }
 0xceb   :  { %3370 = vmatprep.subr.bf16.mxu1 %v3709_v16 }
 0xcee   :  { %3371 = vmatpush3.bf16.msra.mxu1 %v3553_v26 }
 0xd91   :  { %v2348_v24 = vpop.f32.mrf.mxu1 }
 0xd92   :  { %v2349_v21 = vadd.f32 %v2348_v24, %v2240_v25 }
 0xd93   :  { %v3334_v22 = vpop.f32.mrf.mxu1 }
 0xd94   :  { %v2355_v31 = vadd.f32 %v2349_v21, %v1982_v20 }
 0xd95   :  { %v2351_v32 = vpop.f32.mrf.mxu1 }
 0xd96   :  { %v2352_v34 = vadd.f32 %v2351_v32, %v2246_v30  ;;  %v2361_v36 = vadd.f32 %v2360_v61, %v2355_v31 }
 0xd97   :  { %v3335_v35 = vpop.f32.mrf.mxu1 }
 0xd98   :  { %v2356_v27 = vadd.f32 %v2352_v34, %v1985_v33  ;;  %v2363_v37 = vmax.f32 %v2361_v36, 0.0 }
 0xd9a   :  { %v2362_v28 = vadd.f32 %v2360_v61, %v2356_v27 }
 0xd9c   :  { %v2364_v38 = vmax.f32 %v2362_v28, 0.0 }
 0xd9e   :  { %v2381_v39 = vpack.c.bf16 %v2364_v38, %v2363_v37 }
 0xda0   :  { %3353 = vmatmul.mubr.bf16.vlgmr.msra.gmra.mxu0 %v2381_v39 }
 0xda1   :  { %3392 = vmatprep.mubr.msk.bf16.mxu0 %vm3710_vm3, %v3709_v16  ;;  %3377 = vmatpush3.bf16.msra.mxu0 %v3554_v42 }
 0xda2   :  { %3378 = vmatprep.subr.bf16.mxu0 %v3709_v16 }
 0xda5   :  { %3379 = vmatpush3.bf16.msra.mxu0 %v3555_v43 }
 0xda6   :  { %3380 = vmatprep.subr.bf16.mxu0 %v3709_v16 }
 0xda9   :  { %3381 = vmatpush3.bf16.msra.mxu0 %v3556_v44 }
 0xdaa   :  { %3382 = vmatprep.subr.bf16.mxu0 %v3709_v16 }
 0xdad   :  { %3383 = vmatpush3.bf16.msra.mxu0 %v3557_v45 }
 0xdae   :  { %3384 = vmatprep.subr.bf16.mxu0 %v3709_v16 }
 0xdb1   :  { %3385 = vmatpush3.bf16.msra.mxu0 %v3558_v46 }
 0xdb2   :  { %3386 = vmatprep.subr.bf16.mxu0 %v3709_v16 }
 0xdb5   :  { %3387 = vmatpush3.bf16.msra.mxu0 %v3559_v58 }
 0xdb6   :  { %3388 = vmatprep.subr.bf16.mxu0 %v3709_v16 }
 0xdb9   :  { %3389 = vmatpush3.bf16.msra.mxu0 %v3560_v60 }
 0xdba   :  { %3390 = vmatprep.subr.bf16.mxu0 %v3709_v16 }
 0xdbd   :  { %3391 = vmatpush3.bf16.msra.mxu0 %v3561_v62 }
 0xe60   :  { %v2468_v48 = vpop.f32.mrf.mxu0 }
 0xe61   :  { %v2469_v50 = vadd.f32 %v2468_v48, %v2385_v47 }
 0xe62   :  { %v3354_v49 = vpop.f32.mrf.mxu0 }
 0xe63   :  { %v2475_v55 = vmax.f32 %v2469_v50, 0.0 }
 0xe64   :  { %v2471_v52 = vpop.f32.mrf.mxu0 }
 0xe65   :  { %v2472_v53 = vadd.f32 %v2471_v52, %v2385_v47 }
 0xe66   :  { %v3355_v54 = vpop.f32.mrf.mxu0 }
 0xe67   :  { %v2476_v56 = vmax.f32 %v2472_v53, 0.0 }
 0xe69   :  { %v2494_v57 = vpack.c.bf16 %v2476_v56, %v2475_v55 }
 0xe6b   :  { %3373 = vmatmul.mubr.bf16.vlgmr.msra.gmra.mxu1 %v2494_v57 }
 0xf2b   :  { %v2581_v63 = vpop.f32.mrf.mxu1 }
 0xf2c   :  { %v2582_v1 = vadd.f32 %v2581_v63, %v2498_v51 }
 0xf2d   :  { %v3374_v0 = vpop.f32.mrf.mxu1 }
 0xf2e   :  { %v2588_v6 = vmax.f32 %v2582_v1, 0.0 }
 0xf2f   :  { %v2584_v3 = vpop.f32.mrf.mxu1 }
 0xf30   :  { %v2585_v4 = vadd.f32 %v2584_v3, %v2498_v51 }
 0xf31   :  { %v3375_v5 = vpop.f32.mrf.mxu1 }
 0xf32   :  { %v2589_v7 = vmax.f32 %v2585_v4, 0.0 }
 0xf34   :  { %v2606_v23 = vpack.c.bf16 %v2589_v7, %v2588_v6 }
 0xf36   :  { %3393 = vmatmul.mubr.bf16.vlgmr.msra.gmra.mxu0 %v2606_v23 }
 0xff6   :  { %v2693_v2 = vpop.f32.mrf.mxu0 }
 0xff7   :  { %v2694_v16 = vadd.f32 %v2693_v2, %v2610_v8 }
 0xff8   :  { %v3394_v59 = vpop.f32.mrf.mxu0 }
 0xff9   :  { %2700 = vst [vmem:[%s4286_s20] sm:$0xff] %v2694_v16 }
 0xffa   :  { %v2696_v13 = vpop.f32.mrf.mxu0 }
 0xffb   :  { %v2697_v10 = vadd.f32 %v2696_v13, %v2610_v8 }
 0xffc   :  { %v3395_v9 = vpop.f32.mrf.mxu0 }
 0xffd   :  { %2701 = vst [vmem:[%s4286_s20 + $0x8] sm:$0xff] %v2697_v10 }
 0xffe   :  { %2710 = vsyncpa [#allocation3], 1 }
 0xfff   :  { %2711 = vsyncpa [#allocation5], 1 }
0x1000   :  { %2712 = vsyncpa [#allocation8], 1 }
0x1001   :  { %2713 = vsyncpa [#allocation11], 1 }

</bundles_post_ra>
